<compile_context>
chip_gen: v5e
topology: v5e:2x2
jax: 0.10.0
libtpu: 0.0.40
codegen_flags: <defaults>
</compile_context>

<pallas_src>
import functools

import jax
import jax.numpy as jnp
from jax.experimental import pallas as pl
from jax.experimental.pallas import tpu as pltpu


def _rfba_kernel(x_ref, p_ref, out_ref, *, B, C, S, HW, Cmid, Npad, chunk):
    """Single invocation, whole problem in VMEM.

    x_ref  : (B*C, 2*S*HW)  row = b*C + c, col = stream*HW + pixel
                            (backbone A cols [0, S*HW), backbone B cols [S*HW, 2*S*HW))
    p_ref  : (Rp, Npad)     packed parameter slab:
                              rows [0,Cmid)        cols [0,C) = w1a^T, col C = b1a
                              rows [Cmid,2Cmid)    cols [0,C) = w1b^T, col C = b1b
                              rows [2Cmid,4Cmid)   cols [0,numclass) = [w2a; w2b]
                              row  4Cmid           cols [0,numclass) = b2a + b2b
    out_ref: (B, Npad)      lane-dense padded logits (r1 + r2)
    """
    n_bk = S * HW
    n_chunks = n_bk // chunk
    inv = 1.0 / float(n_bk)

    # First-layer weights / biases (static sub-window loads; tiny).
    w1a = p_ref[0:Cmid, 0:C]                  # (Cmid, C)
    b1a = p_ref[0:Cmid, C:C + 1]              # (Cmid, 1)
    w1b = p_ref[Cmid:2 * Cmid, 0:C]
    b1b = p_ref[Cmid:2 * Cmid, C:C + 1]

    def pooled(b, w1, b1, col_base):
        # mean over (streams, pixels) of ReLU(w1 @ x + b1), computed as a few
        # wide-N matmuls with an immediate lane reduction per chunk.
        acc = jnp.zeros((Cmid, 1), jnp.float32)
        for ci in range(n_chunks):
            xc = x_ref[pl.ds(b * C, C),
                       pl.ds(col_base + ci * chunk, chunk)]      # (C, chunk)
            f = jnp.dot(w1, xc, preferred_element_type=jnp.float32) + b1
            f = jnp.maximum(f, 0.0)                              # (Cmid, chunk)
            acc = acc + jnp.sum(f, axis=1, keepdims=True)
        return acc * inv                                         # (Cmid, 1)

    pcats = []
    for b in range(B):
        pa = pooled(b, w1a, b1a, 0)          # backbone 1 (streams 0:9)
        pb = pooled(b, w1b, b1b, n_bk)       # backbone 2 (streams 9:18)
        pcats.append(jnp.concatenate([pa, pb], axis=0))          # (2*Cmid, 1)

    # Fused second FC of both backbones (loaded only now to keep vregs low):
    #   r1 + r2 == [pa; pb] . [w2a; w2b] + (b2a + b2b)
    w2 = p_ref[2 * Cmid:4 * Cmid, :]         # (2*Cmid, Npad)
    b2 = p_ref[4 * Cmid:4 * Cmid + 1, :]     # (1, Npad)
    rows = []
    for b in range(B):
        rows.append(jnp.sum(pcats[b] * w2, axis=0, keepdims=True) + b2)
    out_ref[...] = jnp.concatenate(rows, axis=0)                 # (B, Npad)


def _rfba_forward_impl(inp, params):
    """inp: [B, 18, C, H, W] float32 (PyTorch layout). Returns (out, out)."""
    B, NS, C, H, W = inp.shape
    assert NS == 18, "RFBA expects 18 streams (9 per backbone)"
    S = NS // 2
    HW = H * W
    n_bk = S * HW

    (w1a, b1a, w2a, b2a, w1b, b1b, w2b, b2b) = params
    Cmid = w1a.shape[1]
    numclass = w2a.shape[1]
    Npad = ((numclass + 127) // 128) * 128        # lane-dense output / slab width

    # ---- x: dense (B*C, 18*HW) slab; streams contiguous along lanes. -------
    # (B,18,C,HW) -> (B,C,18,HW) -> (B*C, 18*HW); the 147 KiB XLA transpose is
    # negligible and buys one contiguous, exactly (8,128)-aligned DMA.
    x = inp.reshape(B, NS, C, HW).transpose(0, 2, 1, 3).reshape(B * C, NS * HW)

    # ---- parameters: one packed slab -> one DMA. ---------------------------
    Rp = ((4 * Cmid + 1 + 7) // 8) * 8
    p = jnp.zeros((Rp, Npad), jnp.float32)
    p = p.at[0:Cmid, 0:C].set(jnp.transpose(w1a))                 # w1a^T
    p = p.at[0:Cmid, C:C + 1].set(jnp.transpose(b1a))             # b1a
    p = p.at[Cmid:2 * Cmid, 0:C].set(jnp.transpose(w1b))          # w1b^T
    p = p.at[Cmid:2 * Cmid, C:C + 1].set(jnp.transpose(b1b))      # b1b
    p = p.at[2 * Cmid:4 * Cmid, 0:numclass].set(
        jnp.concatenate([w2a, w2b], axis=0))                      # [w2a; w2b]
    p = p.at[4 * Cmid:4 * Cmid + 1, 0:numclass].set(b2a + b2b)    # b2a + b2b

    # ---- wide-N chunking of the per-backbone matmul. -----------------------
    chunk = 768 if n_bk % 768 == 0 else HW        # (Cmid, chunk) stays <= ~24 vregs

    kernel = functools.partial(
        _rfba_kernel, B=B, C=C, S=S, HW=HW, Cmid=Cmid, Npad=Npad, chunk=chunk)

    flops = 2 * B * 2 * Cmid * C * n_bk + 3 * B * 2 * Cmid * n_bk
    bytes_accessed = int(x.size) * 4 + int(p.size) * 4 + B * Npad * 4

    out_pad = pl.pallas_call(
        kernel,
        out_shape=jax.ShapeDtypeStruct((B, Npad), jnp.float32),
        cost_estimate=pl.CostEstimate(
            flops=flops, transcendentals=0, bytes_accessed=bytes_accessed),
    )(x, p)

    out = out_pad[:, :numclass]
    return out, out


rfba_forward = jax.jit(_rfba_forward_impl)


def rfba_reference(inp, params):
    """Pure-JAX reference of the same synthetic forward (for validation)."""
    B, NS, C, H, W = inp.shape
    S = 9
    HW = H * W
    (w1a, b1a, w2a, b2a, w1b, b1b, w2b, b2b) = params

    def backbone(x, w1, b1, w2, b2):
        x = jnp.transpose(x, (0, 1, 3, 4, 2)).reshape(B, S, HW, C)
        feat = jnp.maximum(jnp.einsum('bsnc,cm->bsnm', x, w1) + b1[0], 0.0)
        pooled = jnp.mean(feat, axis=2)                       # (B, S, Cmid)
        logits = jnp.einsum('bsm,mk->bsk', pooled, w2) + b2[0]
        return jnp.mean(logits, axis=1)                       # (B, numclass)

    r1 = backbone(inp[:, 0:9], w1a, b1a, w2a, b2a)
    r2 = backbone(inp[:, 9:18], w1b, b1b, w2b, b2b)
    return r1 + r2


def make_params(key, C, Cmid, numclass):
    ks = jax.random.split(key, 8)

    def lin(k, fan_in, shape):
        return jax.random.normal(k, shape, jnp.float32) / jnp.sqrt(fan_in)

    w1a = lin(ks[0], C, (C, Cmid));           b1a = 0.01 * jnp.ones((1, Cmid), jnp.float32)
    w2a = lin(ks[1], Cmid, (Cmid, numclass)); b2a = 0.01 * jnp.ones((1, numclass), jnp.float32)
    w1b = lin(ks[2], C, (C, Cmid));           b1b = -0.01 * jnp.ones((1, Cmid), jnp.float32)
    w2b = lin(ks[3], Cmid, (Cmid, numclass)); b2b = -0.01 * jnp.ones((1, numclass), jnp.float32)
    return (w1a, b1a, w2a, b2a, w1b, b1b, w2b, b2b)


if __name__ == "__main__":
    B, C, H, W = 2, 4, 16, 16
    Cmid, numclass = 32, 40

    key = jax.random.PRNGKey(0)
    k_in, k_par = jax.random.split(key)
    inp = jax.random.normal(k_in, (B, 18, C, H, W), jnp.float32)
    params = make_params(k_par, C, Cmid, numclass)

    out, out2 = rfba_forward(inp, params)
    out = jax.block_until_ready(out)

    ref = rfba_reference(inp, params)
    assert out.shape == (B, numclass)
    assert jnp.allclose(out, ref, rtol=2e-3, atol=2e-3), "mismatch vs JAX reference"
    assert jnp.allclose(out2, out), "both returned outputs must match"

    print("KERNEL_OK")
</pallas_src>

<mosaic_0001>
module attributes {stable_mosaic.version = 11 : i64} {
  func.func @_rfba_kernel(%arg0: memref<8x4608xf32, #tpu.memory_space<vmem>>, %arg1: memref<136x128xf32, #tpu.memory_space<vmem>>, %arg2: memref<2x128xf32, #tpu.memory_space<vmem>>) attributes {dimension_semantics = [], scalar_prefetch = 0 : i64, scratch_operands = 0 : i64, tpu.core_type = #tpu.core_type<tc>} {
    %c0 = arith.constant 0 : index
    %c0_0 = arith.constant 0 : index
    %0 = vector.load %arg1[%c0, %c0_0] : memref<136x128xf32, #tpu.memory_space<vmem>>, vector<32x4xf32>
    %c0_1 = arith.constant 0 : index
    %c4 = arith.constant 4 : index
    %1 = vector.load %arg1[%c0_1, %c4] : memref<136x128xf32, #tpu.memory_space<vmem>>, vector<32x1xf32>
    %c32 = arith.constant 32 : index
    %c0_2 = arith.constant 0 : index
    %2 = vector.load %arg1[%c32, %c0_2] : memref<136x128xf32, #tpu.memory_space<vmem>>, vector<32x4xf32>
    %c32_3 = arith.constant 32 : index
    %c4_4 = arith.constant 4 : index
    %3 = vector.load %arg1[%c32_3, %c4_4] : memref<136x128xf32, #tpu.memory_space<vmem>>, vector<32x1xf32>
    %cst = arith.constant 0.000000e+00 : f32
    %4 = vector.broadcast %cst : f32 to vector<32x1xf32>
    %c0_5 = arith.constant 0 : index
    %c0_6 = arith.constant 0 : index
    %5 = vector.load %arg0[%c0_5, %c0_6] : memref<8x4608xf32, #tpu.memory_space<vmem>>, vector<4x768xf32>
    %cst_7 = arith.constant dense<0.000000e+00> : vector<32x768xf32>
    %6 = tpu.matmul %0, %5, %cst_7 {dimension_numbers = #tpu.dot_dimension_numbers<[1], [0], [0], [1], [0, 0, 1, 1], [], []>} : vector<32x4xf32>, vector<4x768xf32>, vector<32x768xf32> -> vector<32x768xf32>
    %7 = vector.broadcast %1 : vector<32x1xf32> to vector<32x768xf32>
    %8 = arith.addf %6, %7 : vector<32x768xf32>
    %cst_8 = arith.constant 0.000000e+00 : f32
    %9 = vector.broadcast %cst_8 : f32 to vector<32x768xf32>
    %10 = arith.maximumf %8, %9 : vector<32x768xf32>
    %cst_9 = arith.constant dense<0.000000e+00> : vector<32xf32>
    %11 = vector.multi_reduction <add>, %10, %cst_9 [1] : vector<32x768xf32> to vector<32xf32>
    %12 = vector.shape_cast %11 : vector<32xf32> to vector<32x1xf32>
    %13 = arith.addf %4, %12 : vector<32x1xf32>
    %c0_10 = arith.constant 0 : index
    %c768 = arith.constant 768 : index
    %14 = vector.load %arg0[%c0_10, %c768] : memref<8x4608xf32, #tpu.memory_space<vmem>>, vector<4x768xf32>
    %cst_11 = arith.constant dense<0.000000e+00> : vector<32x768xf32>
    %15 = tpu.matmul %0, %14, %cst_11 {dimension_numbers = #tpu.dot_dimension_numbers<[1], [0], [0], [1], [0, 0, 1, 1], [], []>} : vector<32x4xf32>, vector<4x768xf32>, vector<32x768xf32> -> vector<32x768xf32>
    %16 = vector.broadcast %1 : vector<32x1xf32> to vector<32x768xf32>
    %17 = arith.addf %15, %16 : vector<32x768xf32>
    %cst_12 = arith.constant 0.000000e+00 : f32
    %18 = vector.broadcast %cst_12 : f32 to vector<32x768xf32>
    %19 = arith.maximumf %17, %18 : vector<32x768xf32>
    %cst_13 = arith.constant dense<0.000000e+00> : vector<32xf32>
    %20 = vector.multi_reduction <add>, %19, %cst_13 [1] : vector<32x768xf32> to vector<32xf32>
    %21 = vector.shape_cast %20 : vector<32xf32> to vector<32x1xf32>
    %22 = arith.addf %13, %21 : vector<32x1xf32>
    %c0_14 = arith.constant 0 : index
    %c1536 = arith.constant 1536 : index
    %23 = vector.load %arg0[%c0_14, %c1536] : memref<8x4608xf32, #tpu.memory_space<vmem>>, vector<4x768xf32>
    %cst_15 = arith.constant dense<0.000000e+00> : vector<32x768xf32>
    %24 = tpu.matmul %0, %23, %cst_15 {dimension_numbers = #tpu.dot_dimension_numbers<[1], [0], [0], [1], [0, 0, 1, 1], [], []>} : vector<32x4xf32>, vector<4x768xf32>, vector<32x768xf32> -> vector<32x768xf32>
    %25 = vector.broadcast %1 : vector<32x1xf32> to vector<32x768xf32>
    %26 = arith.addf %24, %25 : vector<32x768xf32>
    %cst_16 = arith.constant 0.000000e+00 : f32
    %27 = vector.broadcast %cst_16 : f32 to vector<32x768xf32>
    %28 = arith.maximumf %26, %27 : vector<32x768xf32>
    %cst_17 = arith.constant dense<0.000000e+00> : vector<32xf32>
    %29 = vector.multi_reduction <add>, %28, %cst_17 [1] : vector<32x768xf32> to vector<32xf32>
    %30 = vector.shape_cast %29 : vector<32xf32> to vector<32x1xf32>
    %31 = arith.addf %22, %30 : vector<32x1xf32>
    %cst_18 = arith.constant 4.34027781E-4 : f32
    %32 = vector.broadcast %cst_18 : f32 to vector<32x1xf32>
    %33 = arith.mulf %31, %32 : vector<32x1xf32>
    %cst_19 = arith.constant 0.000000e+00 : f32
    %34 = vector.broadcast %cst_19 : f32 to vector<32x1xf32>
    %c0_20 = arith.constant 0 : index
    %c2304 = arith.constant 2304 : index
    %35 = vector.load %arg0[%c0_20, %c2304] : memref<8x4608xf32, #tpu.memory_space<vmem>>, vector<4x768xf32>
    %cst_21 = arith.constant dense<0.000000e+00> : vector<32x768xf32>
    %36 = tpu.matmul %2, %35, %cst_21 {dimension_numbers = #tpu.dot_dimension_numbers<[1], [0], [0], [1], [0, 0, 1, 1], [], []>} : vector<32x4xf32>, vector<4x768xf32>, vector<32x768xf32> -> vector<32x768xf32>
    %37 = vector.broadcast %3 : vector<32x1xf32> to vector<32x768xf32>
    %38 = arith.addf %36, %37 : vector<32x768xf32>
    %cst_22 = arith.constant 0.000000e+00 : f32
    %39 = vector.broadcast %cst_22 : f32 to vector<32x768xf32>
    %40 = arith.maximumf %38, %39 : vector<32x768xf32>
    %cst_23 = arith.constant dense<0.000000e+00> : vector<32xf32>
    %41 = vector.multi_reduction <add>, %40, %cst_23 [1] : vector<32x768xf32> to vector<32xf32>
    %42 = vector.shape_cast %41 : vector<32xf32> to vector<32x1xf32>
    %43 = arith.addf %34, %42 : vector<32x1xf32>
    %c0_24 = arith.constant 0 : index
    %c3072 = arith.constant 3072 : index
    %44 = vector.load %arg0[%c0_24, %c3072] : memref<8x4608xf32, #tpu.memory_space<vmem>>, vector<4x768xf32>
    %cst_25 = arith.constant dense<0.000000e+00> : vector<32x768xf32>
    %45 = tpu.matmul %2, %44, %cst_25 {dimension_numbers = #tpu.dot_dimension_numbers<[1], [0], [0], [1], [0, 0, 1, 1], [], []>} : vector<32x4xf32>, vector<4x768xf32>, vector<32x768xf32> -> vector<32x768xf32>
    %46 = vector.broadcast %3 : vector<32x1xf32> to vector<32x768xf32>
    %47 = arith.addf %45, %46 : vector<32x768xf32>
    %cst_26 = arith.constant 0.000000e+00 : f32
    %48 = vector.broadcast %cst_26 : f32 to vector<32x768xf32>
    %49 = arith.maximumf %47, %48 : vector<32x768xf32>
    %cst_27 = arith.constant dense<0.000000e+00> : vector<32xf32>
    %50 = vector.multi_reduction <add>, %49, %cst_27 [1] : vector<32x768xf32> to vector<32xf32>
    %51 = vector.shape_cast %50 : vector<32xf32> to vector<32x1xf32>
    %52 = arith.addf %43, %51 : vector<32x1xf32>
    %c0_28 = arith.constant 0 : index
    %c3840 = arith.constant 3840 : index
    %53 = vector.load %arg0[%c0_28, %c3840] : memref<8x4608xf32, #tpu.memory_space<vmem>>, vector<4x768xf32>
    %cst_29 = arith.constant dense<0.000000e+00> : vector<32x768xf32>
    %54 = tpu.matmul %2, %53, %cst_29 {dimension_numbers = #tpu.dot_dimension_numbers<[1], [0], [0], [1], [0, 0, 1, 1], [], []>} : vector<32x4xf32>, vector<4x768xf32>, vector<32x768xf32> -> vector<32x768xf32>
    %55 = vector.broadcast %3 : vector<32x1xf32> to vector<32x768xf32>
    %56 = arith.addf %54, %55 : vector<32x768xf32>
    %cst_30 = arith.constant 0.000000e+00 : f32
    %57 = vector.broadcast %cst_30 : f32 to vector<32x768xf32>
    %58 = arith.maximumf %56, %57 : vector<32x768xf32>
    %cst_31 = arith.constant dense<0.000000e+00> : vector<32xf32>
    %59 = vector.multi_reduction <add>, %58, %cst_31 [1] : vector<32x768xf32> to vector<32xf32>
    %60 = vector.shape_cast %59 : vector<32xf32> to vector<32x1xf32>
    %61 = arith.addf %52, %60 : vector<32x1xf32>
    %cst_32 = arith.constant 4.34027781E-4 : f32
    %62 = vector.broadcast %cst_32 : f32 to vector<32x1xf32>
    %63 = arith.mulf %61, %62 : vector<32x1xf32>
    %64 = tpu.concatenate %33, %63 in 0 : vector<32x1xf32>, vector<32x1xf32> -> vector<64x1xf32>
    %cst_33 = arith.constant 0.000000e+00 : f32
    %65 = vector.broadcast %cst_33 : f32 to vector<32x1xf32>
    %c4_34 = arith.constant 4 : index
    %c0_35 = arith.constant 0 : index
    %66 = vector.load %arg0[%c4_34, %c0_35] : memref<8x4608xf32, #tpu.memory_space<vmem>>, vector<4x768xf32>
    %cst_36 = arith.constant dense<0.000000e+00> : vector<32x768xf32>
    %67 = tpu.matmul %0, %66, %cst_36 {dimension_numbers = #tpu.dot_dimension_numbers<[1], [0], [0], [1], [0, 0, 1, 1], [], []>} : vector<32x4xf32>, vector<4x768xf32>, vector<32x768xf32> -> vector<32x768xf32>
    %68 = vector.broadcast %1 : vector<32x1xf32> to vector<32x768xf32>
    %69 = arith.addf %67, %68 : vector<32x768xf32>
    %cst_37 = arith.constant 0.000000e+00 : f32
    %70 = vector.broadcast %cst_37 : f32 to vector<32x768xf32>
    %71 = arith.maximumf %69, %70 : vector<32x768xf32>
    %cst_38 = arith.constant dense<0.000000e+00> : vector<32xf32>
    %72 = vector.multi_reduction <add>, %71, %cst_38 [1] : vector<32x768xf32> to vector<32xf32>
    %73 = vector.shape_cast %72 : vector<32xf32> to vector<32x1xf32>
    %74 = arith.addf %65, %73 : vector<32x1xf32>
    %c4_39 = arith.constant 4 : index
    %c768_40 = arith.constant 768 : index
    %75 = vector.load %arg0[%c4_39, %c768_40] : memref<8x4608xf32, #tpu.memory_space<vmem>>, vector<4x768xf32>
    %cst_41 = arith.constant dense<0.000000e+00> : vector<32x768xf32>
    %76 = tpu.matmul %0, %75, %cst_41 {dimension_numbers = #tpu.dot_dimension_numbers<[1], [0], [0], [1], [0, 0, 1, 1], [], []>} : vector<32x4xf32>, vector<4x768xf32>, vector<32x768xf32> -> vector<32x768xf32>
    %77 = vector.broadcast %1 : vector<32x1xf32> to vector<32x768xf32>
    %78 = arith.addf %76, %77 : vector<32x768xf32>
    %cst_42 = arith.constant 0.000000e+00 : f32
    %79 = vector.broadcast %cst_42 : f32 to vector<32x768xf32>
    %80 = arith.maximumf %78, %79 : vector<32x768xf32>
    %cst_43 = arith.constant dense<0.000000e+00> : vector<32xf32>
    %81 = vector.multi_reduction <add>, %80, %cst_43 [1] : vector<32x768xf32> to vector<32xf32>
    %82 = vector.shape_cast %81 : vector<32xf32> to vector<32x1xf32>
    %83 = arith.addf %74, %82 : vector<32x1xf32>
    %c4_44 = arith.constant 4 : index
    %c1536_45 = arith.constant 1536 : index
    %84 = vector.load %arg0[%c4_44, %c1536_45] : memref<8x4608xf32, #tpu.memory_space<vmem>>, vector<4x768xf32>
    %cst_46 = arith.constant dense<0.000000e+00> : vector<32x768xf32>
    %85 = tpu.matmul %0, %84, %cst_46 {dimension_numbers = #tpu.dot_dimension_numbers<[1], [0], [0], [1], [0, 0, 1, 1], [], []>} : vector<32x4xf32>, vector<4x768xf32>, vector<32x768xf32> -> vector<32x768xf32>
    %86 = vector.broadcast %1 : vector<32x1xf32> to vector<32x768xf32>
    %87 = arith.addf %85, %86 : vector<32x768xf32>
    %cst_47 = arith.constant 0.000000e+00 : f32
    %88 = vector.broadcast %cst_47 : f32 to vector<32x768xf32>
    %89 = arith.maximumf %87, %88 : vector<32x768xf32>
    %cst_48 = arith.constant dense<0.000000e+00> : vector<32xf32>
    %90 = vector.multi_reduction <add>, %89, %cst_48 [1] : vector<32x768xf32> to vector<32xf32>
    %91 = vector.shape_cast %90 : vector<32xf32> to vector<32x1xf32>
    %92 = arith.addf %83, %91 : vector<32x1xf32>
    %cst_49 = arith.constant 4.34027781E-4 : f32
    %93 = vector.broadcast %cst_49 : f32 to vector<32x1xf32>
    %94 = arith.mulf %92, %93 : vector<32x1xf32>
    %cst_50 = arith.constant 0.000000e+00 : f32
    %95 = vector.broadcast %cst_50 : f32 to vector<32x1xf32>
    %c4_51 = arith.constant 4 : index
    %c2304_52 = arith.constant 2304 : index
    %96 = vector.load %arg0[%c4_51, %c2304_52] : memref<8x4608xf32, #tpu.memory_space<vmem>>, vector<4x768xf32>
    %cst_53 = arith.constant dense<0.000000e+00> : vector<32x768xf32>
    %97 = tpu.matmul %2, %96, %cst_53 {dimension_numbers = #tpu.dot_dimension_numbers<[1], [0], [0], [1], [0, 0, 1, 1], [], []>} : vector<32x4xf32>, vector<4x768xf32>, vector<32x768xf32> -> vector<32x768xf32>
    %98 = vector.broadcast %3 : vector<32x1xf32> to vector<32x768xf32>
    %99 = arith.addf %97, %98 : vector<32x768xf32>
    %cst_54 = arith.constant 0.000000e+00 : f32
    %100 = vector.broadcast %cst_54 : f32 to vector<32x768xf32>
    %101 = arith.maximumf %99, %100 : vector<32x768xf32>
    %cst_55 = arith.constant dense<0.000000e+00> : vector<32xf32>
    %102 = vector.multi_reduction <add>, %101, %cst_55 [1] : vector<32x768xf32> to vector<32xf32>
    %103 = vector.shape_cast %102 : vector<32xf32> to vector<32x1xf32>
    %104 = arith.addf %95, %103 : vector<32x1xf32>
    %c4_56 = arith.constant 4 : index
    %c3072_57 = arith.constant 3072 : index
    %105 = vector.load %arg0[%c4_56, %c3072_57] : memref<8x4608xf32, #tpu.memory_space<vmem>>, vector<4x768xf32>
    %cst_58 = arith.constant dense<0.000000e+00> : vector<32x768xf32>
    %106 = tpu.matmul %2, %105, %cst_58 {dimension_numbers = #tpu.dot_dimension_numbers<[1], [0], [0], [1], [0, 0, 1, 1], [], []>} : vector<32x4xf32>, vector<4x768xf32>, vector<32x768xf32> -> vector<32x768xf32>
    %107 = vector.broadcast %3 : vector<32x1xf32> to vector<32x768xf32>
    %108 = arith.addf %106, %107 : vector<32x768xf32>
    %cst_59 = arith.constant 0.000000e+00 : f32
    %109 = vector.broadcast %cst_59 : f32 to vector<32x768xf32>
    %110 = arith.maximumf %108, %109 : vector<32x768xf32>
    %cst_60 = arith.constant dense<0.000000e+00> : vector<32xf32>
    %111 = vector.multi_reduction <add>, %110, %cst_60 [1] : vector<32x768xf32> to vector<32xf32>
    %112 = vector.shape_cast %111 : vector<32xf32> to vector<32x1xf32>
    %113 = arith.addf %104, %112 : vector<32x1xf32>
    %c4_61 = arith.constant 4 : index
    %c3840_62 = arith.constant 3840 : index
    %114 = vector.load %arg0[%c4_61, %c3840_62] : memref<8x4608xf32, #tpu.memory_space<vmem>>, vector<4x768xf32>
    %cst_63 = arith.constant dense<0.000000e+00> : vector<32x768xf32>
    %115 = tpu.matmul %2, %114, %cst_63 {dimension_numbers = #tpu.dot_dimension_numbers<[1], [0], [0], [1], [0, 0, 1, 1], [], []>} : vector<32x4xf32>, vector<4x768xf32>, vector<32x768xf32> -> vector<32x768xf32>
    %116 = vector.broadcast %3 : vector<32x1xf32> to vector<32x768xf32>
    %117 = arith.addf %115, %116 : vector<32x768xf32>
    %cst_64 = arith.constant 0.000000e+00 : f32
    %118 = vector.broadcast %cst_64 : f32 to vector<32x768xf32>
    %119 = arith.maximumf %117, %118 : vector<32x768xf32>
    %cst_65 = arith.constant dense<0.000000e+00> : vector<32xf32>
    %120 = vector.multi_reduction <add>, %119, %cst_65 [1] : vector<32x768xf32> to vector<32xf32>
    %121 = vector.shape_cast %120 : vector<32xf32> to vector<32x1xf32>
    %122 = arith.addf %113, %121 : vector<32x1xf32>
    %cst_66 = arith.constant 4.34027781E-4 : f32
    %123 = vector.broadcast %cst_66 : f32 to vector<32x1xf32>
    %124 = arith.mulf %122, %123 : vector<32x1xf32>
    %125 = tpu.concatenate %94, %124 in 0 : vector<32x1xf32>, vector<32x1xf32> -> vector<64x1xf32>
    %c64 = arith.constant 64 : index
    %c0_67 = arith.constant 0 : index
    %126 = vector.load %arg1[%c64, %c0_67] : memref<136x128xf32, #tpu.memory_space<vmem>>, vector<64x128xf32>
    %c128 = arith.constant 128 : index
    %c0_68 = arith.constant 0 : index
    %127 = vector.load %arg1[%c128, %c0_68] : memref<136x128xf32, #tpu.memory_space<vmem>>, vector<1x128xf32>
    %128 = vector.broadcast %64 : vector<64x1xf32> to vector<64x128xf32>
    %129 = arith.mulf %128, %126 : vector<64x128xf32>
    %cst_69 = arith.constant dense<0.000000e+00> : vector<128xf32>
    %130 = vector.multi_reduction <add>, %129, %cst_69 [0] : vector<64x128xf32> to vector<128xf32>
    %131 = vector.shape_cast %130 : vector<128xf32> to vector<1x128xf32>
    %132 = arith.addf %131, %127 : vector<1x128xf32>
    %133 = vector.broadcast %125 : vector<64x1xf32> to vector<64x128xf32>
    %134 = arith.mulf %133, %126 : vector<64x128xf32>
    %cst_70 = arith.constant dense<0.000000e+00> : vector<128xf32>
    %135 = vector.multi_reduction <add>, %134, %cst_70 [0] : vector<64x128xf32> to vector<128xf32>
    %136 = vector.shape_cast %135 : vector<128xf32> to vector<1x128xf32>
    %137 = arith.addf %136, %127 : vector<1x128xf32>
    %138 = tpu.concatenate %132, %137 in 0 : vector<1x128xf32>, vector<1x128xf32> -> vector<2x128xf32>
    %c0_71 = arith.constant 0 : index
    %c0_72 = arith.constant 0 : index
    %139 = vector.load %arg2[%c0_71, %c0_72] : memref<2x128xf32, #tpu.memory_space<vmem>>, vector<2x128xf32>
    tpu.vector_store %arg2[%c0_71, %c0_72], %138 {strides = array<i32>} : memref<2x128xf32, #tpu.memory_space<vmem>>, vector<2x128xf32>,
    return
  }
}

</mosaic_0001>

<bundles_post_ra>
// kernel: _rfba_forward_impl.1
= control target key start
LH: loop header
LB: loop body
LE: loop exit
PB: predicated region body
PF: predicated region fallthrough
CT: control target
= control target key end

     0   :  { %vm54_vm0 = vcmask 1043456   ;;  %vm45_vm1 = vcmask 31744   ;;  %v3696_v3 = vmov 4   ;;  %vm3313_vm2 = vcmask 1040384   ;;  %s5341_s0 = inlined_call_operand.vmem [shape: f32[8,4608], index: 0, kind: input, shape index: {}]   ;;  %s5342_s1 = inlined_call_operand.vmem [shape: f32[136,128], index: 1, kind: input, shape index: {}]   ;;  %s5343_s2 = inlined_call_operand.vmem [shape: f32[2,128], index: 2, kind: output, shape index: {}]  }
   0x1   :  { %v19_v0 = vld [vmem:[%s5341_s0] sm:$0xf]  ;;  %v20_v1 = vld [vmem:[%s5341_s0 + $0x8] sm:$0xf]  ;;  %v21_v2 = vld [vmem:[%s5341_s0 + $0x10] sm:$0xf]  ;;  %3682 = vset.pattern.permute.xlu0 %v3696_v3  ;;  %3683 = vset.pattern.permute.xlu1 %v3696_v3 }
   0x2   :  { %3320 = vmatpush.msk.msra.mxu0 %vm54_vm0, %v19_v0  ;;  %3325 = vmatpush.msk.msra.mxu1 %vm54_vm0, %v20_v1  ;;  %v22_v4 = vld [vmem:[%s5341_s0 + $0x18] sm:$0xf]  ;;  %v3730_v5 = vld [vmem:[%s5342_s1] sm:$0xff]  ;;  %v24_v7 = vld [vmem:[%s5341_s0 + $0x28] sm:$0xf] }
   0x3   :  { %3330 = vmatpush.msk.msra.mxu2 %vm54_vm0, %v21_v2  ;;  %3335 = vmatpush.msk.msra.mxu3 %vm54_vm0, %v22_v4  ;;  %v23_v6 = vld [vmem:[%s5341_s0 + $0x20] sm:$0xf]  ;;  %v303_v8 = vld [vmem:[%s5341_s0 + $0x30] sm:$0xf]  ;;  %v304_v9 = vld [vmem:[%s5341_s0 + $0x38] sm:$0xf] }
   0x4   :  { %3321 = vmatmul.msk.f32.vlgmr.msra.gmra.mxu0 %vm45_vm1, %v3730_v5  ;;  %3326 = vmatmul.msk.f32.vlgmr.msra.gmra.mxu1 %vm45_vm1, %v3730_v5  ;;  %v305_v10 = vld [vmem:[%s5341_s0 + $0x40] sm:$0xf]  ;;  %v306_v11 = vld [vmem:[%s5341_s0 + $0x48] sm:$0xf]  ;;  %v3766_v12 = vld [vmem:[%s5342_s1 + $0x10] sm:$0xff] }
   0x5   :  { %3331 = vmatmul.msk.f32.vlgmr.msra.gmra.mxu2 %vm45_vm1, %v3730_v5  ;;  %3336 = vmatmul.msk.f32.vlgmr.msra.gmra.mxu3 %vm45_vm1, %v3730_v5  ;;  %v3774_v13 = vld [vmem:[%s5342_s1 + $0x8] sm:$0xff]  ;;  %v3790_v14 = vld [vmem:[%s5342_s1 + $0x18] sm:$0xff]  ;;  %v307_v15 = vld [vmem:[%s5341_s0 + $0x50] sm:$0xf] }
   0x6   :  { %3340 = vmatpush.msk.msrb.mxu0 %vm54_vm0, %v23_v6  ;;  %3345 = vmatpush.msk.msrb.mxu1 %vm54_vm0, %v24_v7  ;;  %v308_v16 = vld [vmem:[%s5341_s0 + $0x58] sm:$0xf]  ;;  %v557_v17 = vld [vmem:[%s5341_s0 + $0x60] sm:$0xf]  ;;  %v558_v18 = vld [vmem:[%s5341_s0 + $0x68] sm:$0xf] }
   0x7   :  { %27 = vperm.xlu0 %3682, %v3730_v5   ;;  %3350 = vmatpush.msk.msrb.mxu2 %vm54_vm0, %v303_v8  ;;  %v559_v19 = vld [vmem:[%s5341_s0 + $0x70] sm:$0xf]  ;;  %v560_v20 = vld [vmem:[%s5341_s0 + $0x78] sm:$0xf]  ;;  %v3868_v21 = vld [vmem:[%s5342_s1 + $0x28] sm:$0xff] }
   0x8   :  { %3355 = vmatpush.msk.msrb.mxu3 %vm54_vm0, %v304_v9  ;;  %37 = vperm.xlu1 %3683, %v3766_v12   ;;  %v561_v22 = vld [vmem:[%s5341_s0 + $0x80] sm:$0xf]  ;;  %v562_v23 = vld [vmem:[%s5341_s0 + $0x88] sm:$0xf]  ;;  %v3888_v24 = vld [vmem:[%s5342_s1 + $0x38] sm:$0xff] }
   0x9   :  { %3360 = vmatpush.msk.msra.mxu0 %vm54_vm0, %v305_v10  ;;  %3365 = vmatpush.msk.msra.mxu1 %vm54_vm0, %v306_v11  ;;  %v815_v25 = vld [vmem:[%s5341_s0 + $0x90] sm:$0xf]  ;;  %v816_v26 = vld [vmem:[%s5341_s0 + $0x98] sm:$0xf]  ;;  %v3928_v27 = vld [vmem:[%s5342_s1 + $0x20] sm:$0xff] }
   0xa   :  { %3684 = vset.pattern.permute.xlu2 %v3696_v3  ;;  %3370 = vmatpush.msk.msra.mxu2 %vm54_vm0, %v307_v15  ;;  %v817_v28 = vld [vmem:[%s5341_s0 + $0xa0] sm:$0xf]  ;;  %v818_v29 = vld [vmem:[%s5341_s0 + $0xa8] sm:$0xf]  ;;  %v3950_v30 = vld [vmem:[%s5342_s1 + $0x30] sm:$0xff] }
   0xb   :  { %3375 = vmatpush.msk.msra.mxu3 %vm54_vm0, %v308_v16  ;;  %823 = vperm.xlu2 %3684, %v3928_v27   ;;  %v819_v31 = vld [vmem:[%s5341_s0 + $0xb0] sm:$0xf]  ;;  %v820_v32 = vld [vmem:[%s5341_s0 + $0xb8] sm:$0xf]  ;;  %v1097_v35 = vld [vmem:[%s5341_s0 + $0xc0] sm:$0xf] }
   0xc   :  { %3322 = vmatmul.msk.f32.gmra.mxu0 %vm45_vm1, %v3774_v13  ;;  %3327 = vmatmul.msk.f32.gmra.mxu1 %vm45_vm1, %v3774_v13  ;;  %v1098_v36 = vld [vmem:[%s5341_s0 + $0xc8] sm:$0xf]  ;;  %v1099_v48 = vld [vmem:[%s5341_s0 + $0xd0] sm:$0xf]  ;;  %v1100_v60 = vld [vmem:[%s5341_s0 + $0xd8] sm:$0xf] }
   0xd   :  { %3332 = vmatmul.msk.f32.gmra.mxu2 %vm45_vm1, %v3774_v13  ;;  %3337 = vmatmul.msk.f32.gmra.mxu3 %vm45_vm1, %v3774_v13 }
   0xf   :  { %32 = vperm.xlu0 %3682, %v3774_v13  }
  0x10   :  { %42 = vperm.xlu1 %3683, %v3790_v14  }
  0x14   :  { %3323 = vmatmul.msk.f32.gmra.mxu0 %vm45_vm1, %v3766_v12  ;;  %3328 = vmatmul.msk.f32.gmra.mxu1 %vm45_vm1, %v3766_v12 }
  0x15   :  { %3333 = vmatmul.msk.f32.gmra.mxu2 %vm45_vm1, %v3766_v12  ;;  %3338 = vmatmul.msk.f32.gmra.mxu3 %vm45_vm1, %v3766_v12 }
  0x17   :  { %828 = vperm.xlu0 %3682, %v3868_v21  }
  0x18   :  { %833 = vperm.xlu1 %3683, %v3950_v30  }
  0x1c   :  { %3324 = vmatmul.msk.f32.gmra.mxu0 %vm45_vm1, %v3790_v14  ;;  %3329 = vmatmul.msk.f32.gmra.mxu1 %vm45_vm1, %v3790_v14 }
  0x1d   :  { %3334 = vmatmul.msk.f32.gmra.mxu2 %vm45_vm1, %v3790_v14  ;;  %3339 = vmatmul.msk.f32.gmra.mxu3 %vm45_vm1, %v3790_v14 }
  0x1f   :  { %838 = vperm.xlu0 %3682, %v3888_v24  }
  0x24   :  { %3341 = vmatmul.msk.f32.vlgmr.msrb.gmra.mxu0 %vm45_vm1, %v3730_v5  ;;  %3346 = vmatmul.msk.f32.vlgmr.msrb.gmra.mxu1 %vm45_vm1, %v3730_v5 }
  0x25   :  { %3351 = vmatmul.msk.f32.vlgmr.msrb.gmra.mxu2 %vm45_vm1, %v3730_v5  ;;  %3356 = vmatmul.msk.f32.vlgmr.msrb.gmra.mxu3 %vm45_vm1, %v3730_v5 }
  0x26   :  { %3380 = vmatpush.msk.msrb.mxu0 %vm54_vm0, %v557_v17  ;;  %3385 = vmatpush.msk.msrb.mxu1 %vm54_vm0, %v558_v18 }
  0x27   :  { %3390 = vmatpush.msk.msrb.mxu2 %vm54_vm0, %v559_v19  ;;  %3395 = vmatpush.msk.msrb.mxu3 %vm54_vm0, %v560_v20 }
  0x2c   :  { %3342 = vmatmul.msk.f32.gmra.mxu0 %vm45_vm1, %v3774_v13  ;;  %3347 = vmatmul.msk.f32.gmra.mxu1 %vm45_vm1, %v3774_v13 }
  0x2d   :  { %3352 = vmatmul.msk.f32.gmra.mxu2 %vm45_vm1, %v3774_v13  ;;  %3357 = vmatmul.msk.f32.gmra.mxu3 %vm45_vm1, %v3774_v13 }
  0x34   :  { %3343 = vmatmul.msk.f32.gmra.mxu0 %vm45_vm1, %v3766_v12  ;;  %3348 = vmatmul.msk.f32.gmra.mxu1 %vm45_vm1, %v3766_v12 }
  0x35   :  { %3353 = vmatmul.msk.f32.gmra.mxu2 %vm45_vm1, %v3766_v12  ;;  %3358 = vmatmul.msk.f32.gmra.mxu3 %vm45_vm1, %v3766_v12 }
  0x3c   :  { %3344 = vmatmul.msk.f32.gmra.mxu0 %vm45_vm1, %v3790_v14  ;;  %3349 = vmatmul.msk.f32.gmra.mxu1 %vm45_vm1, %v3790_v14 }
  0x3d   :  { %3354 = vmatmul.msk.f32.gmra.mxu2 %vm45_vm1, %v3790_v14  ;;  %3359 = vmatmul.msk.f32.gmra.mxu3 %vm45_vm1, %v3790_v14 }
  0x44   :  { %3361 = vmatmul.msk.f32.vlgmr.msra.gmra.mxu0 %vm45_vm1, %v3730_v5  ;;  %3366 = vmatmul.msk.f32.vlgmr.msra.gmra.mxu1 %vm45_vm1, %v3730_v5 }
  0x45   :  { %3371 = vmatmul.msk.f32.vlgmr.msra.gmra.mxu2 %vm45_vm1, %v3730_v5  ;;  %3376 = vmatmul.msk.f32.vlgmr.msra.gmra.mxu3 %vm45_vm1, %v3730_v5 }
  0x46   :  { %3400 = vmatpush.msk.msra.mxu0 %vm54_vm0, %v561_v22  ;;  %3405 = vmatpush.msk.msra.mxu1 %vm54_vm0, %v562_v23 }
  0x47   :  { %3410 = vmatpush.msk.msra.mxu2 %vm54_vm0, %v815_v25  ;;  %3415 = vmatpush.msk.msra.mxu3 %vm54_vm0, %v816_v26 }
  0x4c   :  { %3362 = vmatmul.msk.f32.gmra.mxu0 %vm45_vm1, %v3774_v13  ;;  %3367 = vmatmul.msk.f32.gmra.mxu1 %vm45_vm1, %v3774_v13 }
  0x4d   :  { %3372 = vmatmul.msk.f32.gmra.mxu2 %vm45_vm1, %v3774_v13  ;;  %3377 = vmatmul.msk.f32.gmra.mxu3 %vm45_vm1, %v3774_v13 }
  0x54   :  { %3363 = vmatmul.msk.f32.gmra.mxu0 %vm45_vm1, %v3766_v12  ;;  %3368 = vmatmul.msk.f32.gmra.mxu1 %vm45_vm1, %v3766_v12 }
  0x55   :  { %3373 = vmatmul.msk.f32.gmra.mxu2 %vm45_vm1, %v3766_v12  ;;  %3378 = vmatmul.msk.f32.gmra.mxu3 %vm45_vm1, %v3766_v12 }
  0x5c   :  { %3364 = vmatmul.msk.f32.gmra.mxu0 %vm45_vm1, %v3790_v14  ;;  %3369 = vmatmul.msk.f32.gmra.mxu1 %vm45_vm1, %v3790_v14 }
  0x5d   :  { %3374 = vmatmul.msk.f32.gmra.mxu2 %vm45_vm1, %v3790_v14  ;;  %3379 = vmatmul.msk.f32.gmra.mxu3 %vm45_vm1, %v3790_v14 }
  0x64   :  { %3381 = vmatmul.msk.f32.vlgmr.msrb.gmra.mxu0 %vm45_vm1, %v3730_v5  ;;  %3386 = vmatmul.msk.f32.vlgmr.msrb.gmra.mxu1 %vm45_vm1, %v3730_v5 }
  0x65   :  { %3391 = vmatmul.msk.f32.vlgmr.msrb.gmra.mxu2 %vm45_vm1, %v3730_v5  ;;  %3396 = vmatmul.msk.f32.vlgmr.msrb.gmra.mxu3 %vm45_vm1, %v3730_v5 }
  0x66   :  { %3420 = vmatpush.msk.msrb.mxu0 %vm54_vm0, %v817_v28  ;;  %3425 = vmatpush.msk.msrb.mxu1 %vm54_vm0, %v818_v29  ;;  %v1101_v29 = vld [vmem:[%s5341_s0 + $0xe0] sm:$0xf] }
  0x67   :  { %3430 = vmatpush.msk.msrb.mxu2 %vm54_vm0, %v819_v31  ;;  %3435 = vmatpush.msk.msrb.mxu3 %vm54_vm0, %v820_v32  ;;  %v1102_v31 = vld [vmem:[%s5341_s0 + $0xe8] sm:$0xf] }
  0x6c   :  { %3382 = vmatmul.msk.f32.gmra.mxu0 %vm45_vm1, %v3774_v13  ;;  %3387 = vmatmul.msk.f32.gmra.mxu1 %vm45_vm1, %v3774_v13 }
  0x6d   :  { %3392 = vmatmul.msk.f32.gmra.mxu2 %vm45_vm1, %v3774_v13  ;;  %3397 = vmatmul.msk.f32.gmra.mxu3 %vm45_vm1, %v3774_v13 }
  0x74   :  { %3383 = vmatmul.msk.f32.gmra.mxu0 %vm45_vm1, %v3766_v12  ;;  %3388 = vmatmul.msk.f32.gmra.mxu1 %vm45_vm1, %v3766_v12 }
  0x75   :  { %3393 = vmatmul.msk.f32.gmra.mxu2 %vm45_vm1, %v3766_v12  ;;  %3398 = vmatmul.msk.f32.gmra.mxu3 %vm45_vm1, %v3766_v12 }
  0x79   :  { %v4009_v41 = vpop.permute.xlu0 %27 }
  0x7a   :  { %v4047_v1 = vpop.permute.xlu1 %37 }
  0x7c   :  { %3384 = vmatmul.msk.f32.gmra.mxu0 %vm45_vm1, %v3790_v14  ;;  %3389 = vmatmul.msk.f32.gmra.mxu1 %vm45_vm1, %v3790_v14 }
  0x7d   :  { %3394 = vmatmul.msk.f32.gmra.mxu2 %vm45_vm1, %v3790_v14  ;;  %3399 = vmatmul.msk.f32.gmra.mxu3 %vm45_vm1, %v3790_v14 }
  0x81   :  { %v90_v33 = vpop.f32.mrf.mxu0  ;;  %v119_v34 = vpop.f32.mrf.mxu1 }
  0x82   :  { %v91_v46 = vadd.f32 %v90_v33, %v4009_v41  ;;  %v120_v47 = vadd.f32 %v119_v34, %v4009_v41  ;;  %v4031_v58 = vpop.permute.xlu0 %32 }
  0x84   :  { %3401 = vmatmul.msk.f32.vlgmr.msra.gmra.mxu0 %vm45_vm1, %v3730_v5  ;;  %3406 = vmatmul.msk.f32.vlgmr.msra.gmra.mxu1 %vm45_vm1, %v3730_v5  ;;  %v247_v52 = vmax.f32 %v91_v46, 0.0  ;;  %v248_v53 = vmax.f32 %v120_v47, 0.0 }
  0x85   :  { %3411 = vmatmul.msk.f32.vlgmr.msra.gmra.mxu2 %vm45_vm1, %v3928_v27  ;;  %3416 = vmatmul.msk.f32.vlgmr.msra.gmra.mxu3 %vm45_vm1, %v3928_v27 }
  0x86   :  { %3440 = vmatpush.msk.msra.mxu0 %vm54_vm0, %v1097_v35  ;;  %3445 = vmatpush.msk.msra.mxu1 %vm54_vm0, %v1098_v36  ;;  %v271_v59 = vadd.f32 %v248_v53, %v247_v52 }
  0x87   :  { %3450 = vmatpush.msk.msra.mxu2 %vm54_vm0, %v1099_v48  ;;  %3455 = vmatpush.msk.msra.mxu3 %vm54_vm0, %v1100_v60 }
  0x88   :  { %v148_v37 = vpop.f32.mrf.mxu2  ;;  %v177_v38 = vpop.f32.mrf.mxu3 }
  0x89   :  { %v93_v39 = vpop.f32.mrf.mxu0  ;;  %v122_v40 = vpop.f32.mrf.mxu1  ;;  %v149_v49 = vadd.f32 %v148_v37, %v4009_v41  ;;  %v178_v57 = vadd.f32 %v177_v38, %v4009_v41 }
  0x8a   :  { %v94_v61 = vadd.f32 %v93_v39, %v4031_v58  ;;  %v123_v62 = vadd.f32 %v122_v40, %v4031_v58  ;;  %v4081_v40 = vpop.permute.xlu1 %42 }
  0x8b   :  { %v249_v56 = vmax.f32 %v149_v49, 0.0  ;;  %v250_v0 = vmax.f32 %v178_v57, 0.0 }
  0x8c   :  { %3402 = vmatmul.msk.f32.gmra.mxu0 %vm45_vm1, %v3774_v13  ;;  %3407 = vmatmul.msk.f32.gmra.mxu1 %vm45_vm1, %v3774_v13  ;;  %v253_v7 = vmax.f32 %v94_v61, 0.0  ;;  %v254_v8 = vmax.f32 %v123_v62, 0.0 }
  0x8d   :  { %3412 = vmatmul.msk.f32.gmra.mxu2 %vm45_vm1, %v3868_v21  ;;  %3417 = vmatmul.msk.f32.gmra.mxu3 %vm45_vm1, %v3868_v21  ;;  %v272_v63 = vadd.f32 %v271_v59, %v249_v56 }
  0x8e   :  { %v278_v18 = vadd.f32 %v254_v8, %v253_v7 }
  0x8f   :  { %v273_v11 = vadd.f32 %v272_v63, %v250_v0 }
  0x90   :  { %v151_v42 = vpop.f32.mrf.mxu2  ;;  %v180_v43 = vpop.f32.mrf.mxu3 }
  0x91   :  { %v96_v44 = vpop.f32.mrf.mxu0  ;;  %v125_v45 = vpop.f32.mrf.mxu1  ;;  %v152_v2 = vadd.f32 %v151_v42, %v4031_v58  ;;  %v181_v13 = vadd.f32 %v180_v43, %v4031_v58 }
  0x92   :  { %v97_v16 = vadd.f32 %v96_v44, %v4047_v1  ;;  %v126_v17 = vadd.f32 %v125_v45, %v4047_v1 }
  0x93   :  { %v256_v23 = vmax.f32 %v181_v13, 0.0 }
  0x94   :  { %3403 = vmatmul.msk.f32.gmra.mxu0 %vm45_vm1, %v3766_v12  ;;  %3408 = vmatmul.msk.f32.gmra.mxu1 %vm45_vm1, %v3766_v12  ;;  %v255_v12 = vmax.f32 %v152_v2, 0.0  ;;  %v259_v32 = vmax.f32 %v97_v16, 0.0  ;;  %v260_v33 = vmax.f32 %v126_v17, 0.0  ;;  %v1352_v16 = vld [vmem:[%s5341_s0 + $0xf8] sm:$0xf] }
  0x95   :  { %3413 = vmatmul.msk.f32.gmra.mxu2 %vm45_vm1, %v3950_v30  ;;  %3418 = vmatmul.msk.f32.gmra.mxu3 %vm45_vm1, %v3950_v30 }
  0x96   :  { %v279_v22 = vadd.f32 %v278_v18, %v255_v12  ;;  %v285_v45 = vadd.f32 %v260_v33, %v259_v32 }
  0x98   :  { %v154_v50 = vpop.f32.mrf.mxu2  ;;  %v183_v51 = vpop.f32.mrf.mxu3  ;;  %v280_v42 = vadd.f32 %v279_v22, %v256_v23 }
  0x99   :  { %v4026_v54 = vpop.f32.mrf.mxu0  ;;  %v4028_v55 = vpop.f32.mrf.mxu1  ;;  %v155_v20 = vadd.f32 %v154_v50, %v4047_v1  ;;  %v184_v39 = vadd.f32 %v183_v51, %v4047_v1 }
  0x9a   :  { %v100_v46 = vadd.f32 %v4026_v54, %v4081_v40  ;;  %v129_v47 = vadd.f32 %v4028_v55, %v4081_v40 }
  0x9b   :  { %v261_v38 = vmax.f32 %v155_v20, 0.0  ;;  %v262_v50 = vmax.f32 %v184_v39, 0.0 }
  0x9c   :  { %3404 = vmatmul.msk.f32.gmra.mxu0 %vm45_vm1, %v3790_v14  ;;  %3409 = vmatmul.msk.f32.gmra.mxu1 %vm45_vm1, %v3790_v14  ;;  %v265_v60 = vmax.f32 %v100_v46, 0.0  ;;  %v266_v61 = vmax.f32 %v129_v47, 0.0 }
  0x9d   :  { %3414 = vmatmul.msk.f32.gmra.mxu2 %vm45_vm1, %v3888_v24  ;;  %3419 = vmatmul.msk.f32.gmra.mxu3 %vm45_vm1, %v3888_v24  ;;  %v286_v49 = vadd.f32 %v285_v45, %v261_v38 }
  0x9f   :  { %v287_v54 = vadd.f32 %v286_v49, %v262_v50 }
  0xa0   :  { %v157_v3 = vpop.f32.mrf.mxu2  ;;  %v4050_v4 = vpop.f32.mrf.mxu3 }
  0xa1   :  { %v206_v5 = vpop.f32.mrf.mxu0  ;;  %v235_v6 = vpop.f32.mrf.mxu1  ;;  %v158_v51 = vadd.f32 %v157_v3, %v4081_v40  ;;  %v187_v55 = vadd.f32 %v4050_v4, %v4081_v40  ;;  %v292_v3 = vadd.f32 %v266_v61, %v265_v60 }
  0xa2   :  { %v207_v9 = vadd.f32 %v206_v5, %v4009_v41  ;;  %v236_v10 = vadd.f32 %v235_v6, %v4009_v41 }
  0xa3   :  { %v267_v0 = vmax.f32 %v158_v51, 0.0  ;;  %v268_v8 = vmax.f32 %v187_v55, 0.0 }
  0xa4   :  { %v251_v14 = vmax.f32 %v207_v9, 0.0  ;;  %v252_v15 = vmax.f32 %v236_v10, 0.0  ;;  %3421 = vmatmul.msk.f32.vlgmr.msrb.gmra.mxu0 %vm45_vm1, %v3928_v27  ;;  %3426 = vmatmul.msk.f32.vlgmr.msrb.gmra.mxu1 %vm45_vm1, %v3928_v27 }
  0xa5   :  { %3431 = vmatmul.msk.f32.vlgmr.msrb.gmra.mxu2 %vm45_vm1, %v3928_v27  ;;  %3436 = vmatmul.msk.f32.vlgmr.msrb.gmra.mxu3 %vm45_vm1, %v3928_v27  ;;  %v293_v7 = vadd.f32 %v292_v3, %v267_v0 }
  0xa6   :  { %v274_v19 = vadd.f32 %v273_v11, %v251_v14  ;;  %3460 = vmatpush.msk.msrb.mxu0 %vm54_vm0, %v1101_v29  ;;  %3465 = vmatpush.msk.msrb.mxu1 %vm54_vm0, %v1102_v31  ;;  %v1351_v11 = vld [vmem:[%s5341_s0 + $0xf0] sm:$0xf] }
  0xa7   :  { %3470 = vmatpush.msk.msrb.mxu2 %vm54_vm0, %v1351_v11  ;;  %v294_v17 = vadd.f32 %v293_v7, %v268_v8  ;;  %3475 = vmatpush.msk.msrb.mxu3 %vm54_vm0, %v1352_v16 }
  0xa8   :  { %v4066_v25 = vpop.f32.mrf.mxu2  ;;  %v4068_v26 = vpop.f32.mrf.mxu3  ;;  %v275_v28 = vadd.f32 %v274_v19, %v252_v15 }
  0xa9   :  { %v209_v34 = vpop.f32.mrf.mxu0  ;;  %v238_v35 = vpop.f32.mrf.mxu1  ;;  %v345_v20 = vadd.f32 %v4066_v25, %v4009_v41  ;;  %v374_v22 = vadd.f32 %v4068_v26, %v4009_v41 }
  0xaa   :  { %v210_v36 = vadd.f32 %v209_v34, %v4031_v58  ;;  %v239_v37 = vadd.f32 %v238_v35, %v4031_v58  ;;  %276 = vadd.xlane.f32.xlu2 %v275_v28 }
  0xab   :  { %v501_v32 = vmax.f32 %v345_v20, 0.0  ;;  %v502_v33 = vmax.f32 %v374_v22, 0.0 }
  0xac   :  { %v257_v43 = vmax.f32 %v210_v36, 0.0  ;;  %v258_v44 = vmax.f32 %v239_v37, 0.0  ;;  %3422 = vmatmul.msk.f32.gmra.mxu0 %vm45_vm1, %v3868_v21  ;;  %3427 = vmatmul.msk.f32.gmra.mxu1 %vm45_vm1, %v3868_v21 }
  0xad   :  { %3432 = vmatmul.msk.f32.gmra.mxu2 %vm45_vm1, %v3868_v21  ;;  %3437 = vmatmul.msk.f32.gmra.mxu3 %vm45_vm1, %v3868_v21  ;;  %v525_v37 = vadd.f32 %v502_v33, %v501_v32  ;;  %v1353_v32 = vld [vmem:[%s5341_s0 + $0x100] sm:$0xf] }
  0xae   :  { %v281_v48 = vadd.f32 %v280_v42, %v257_v43 }
  0xb0   :  { %v347_v52 = vpop.f32.mrf.mxu2  ;;  %v376_v53 = vpop.f32.mrf.mxu3  ;;  %v282_v56 = vadd.f32 %v281_v48, %v258_v44 }
  0xb1   :  { %v212_v57 = vpop.f32.mrf.mxu0  ;;  %v241_v59 = vpop.f32.mrf.mxu1  ;;  %v348_v38 = vadd.f32 %v347_v52, %v4031_v58  ;;  %v377_v39 = vadd.f32 %v376_v53, %v4031_v58 }
  0xb2   :  { %v213_v62 = vadd.f32 %v212_v57, %v4047_v1  ;;  %v242_v63 = vadd.f32 %v241_v59, %v4047_v1  ;;  %283 = vadd.xlane.f32.xlu2 %v282_v56 }
  0xb3   :  { %v507_v46 = vmax.f32 %v348_v38, 0.0  ;;  %v508_v47 = vmax.f32 %v377_v39, 0.0 }
  0xb4   :  { %v263_v2 = vmax.f32 %v213_v62, 0.0  ;;  %v264_v5 = vmax.f32 %v242_v63, 0.0  ;;  %3423 = vmatmul.msk.f32.gmra.mxu0 %vm45_vm1, %v3950_v30  ;;  %3428 = vmatmul.msk.f32.gmra.mxu1 %vm45_vm1, %v3950_v30 }
  0xb5   :  { %3433 = vmatmul.msk.f32.gmra.mxu2 %vm45_vm1, %v3950_v30  ;;  %3438 = vmatmul.msk.f32.gmra.mxu3 %vm45_vm1, %v3950_v30  ;;  %v532_v63 = vadd.f32 %v508_v47, %v507_v46 }
  0xb6   :  { %v288_v6 = vadd.f32 %v287_v54, %v263_v2 }
  0xb8   :  { %v350_v9 = vpop.f32.mrf.mxu2  ;;  %v379_v4 = vpop.f32.mrf.mxu3  ;;  %v289_v10 = vadd.f32 %v288_v6, %v264_v5 }
  0xb9   :  { %v215_v12 = vpop.f32.mrf.mxu0  ;;  %v244_v13 = vpop.f32.mrf.mxu1  ;;  %v351_v60 = vadd.f32 %v350_v9, %v4047_v1  ;;  %v380_v61 = vadd.f32 %v379_v4, %v4047_v1 }
  0xba   :  { %v216_v14 = vadd.f32 %v215_v12, %v4081_v40  ;;  %v245_v15 = vadd.f32 %v244_v13, %v4081_v40  ;;  %290 = vadd.xlane.f32.xlu0 %v289_v10 }
  0xbb   :  { %v513_v5 = vmax.f32 %v351_v60, 0.0  ;;  %v514_v3 = vmax.f32 %v380_v61, 0.0 }
  0xbc   :  { %v269_v18 = vmax.f32 %v216_v14, 0.0  ;;  %v270_v19 = vmax.f32 %v245_v15, 0.0  ;;  %3424 = vmatmul.msk.f32.gmra.mxu0 %vm45_vm1, %v3888_v24  ;;  %3429 = vmatmul.msk.f32.gmra.mxu1 %vm45_vm1, %v3888_v24 }
  0xbd   :  { %3434 = vmatmul.msk.f32.gmra.mxu2 %vm45_vm1, %v3888_v24  ;;  %3439 = vmatmul.msk.f32.gmra.mxu3 %vm45_vm1, %v3888_v24  ;;  %v539_v16 = vadd.f32 %v514_v3, %v513_v5 }
  0xbe   :  { %v295_v23 = vadd.f32 %v294_v17, %v269_v18 }
  0xc0   :  { %v4130_v28 = vpop.f32.mrf.mxu2  ;;  %v4132_v29 = vpop.f32.mrf.mxu3  ;;  %v296_v31 = vadd.f32 %v295_v23, %v270_v19 }
  0xc1   :  { %v402_v25 = vpop.f32.mrf.mxu0  ;;  %v431_v34 = vpop.f32.mrf.mxu1  ;;  %v354_v18 = vadd.f32 %v4130_v28, %v4081_v40  ;;  %v383_v19 = vadd.f32 %v4132_v29, %v4081_v40  ;;  %v1355_v28 = vld [vmem:[%s5341_s0 + $0x110] sm:$0xf] }
  0xc2   :  { %v403_v26 = vadd.f32 %v402_v25, %v4009_v41  ;;  %297 = vadd.xlane.f32.xlu1 %v296_v31  ;;  %v432_v35 = vadd.f32 %v431_v34, %v4009_v41 }
  0xc3   :  { %v519_v25 = vmax.f32 %v354_v18, 0.0  ;;  %v520_v34 = vmax.f32 %v383_v19, 0.0 }
  0xc4   :  { %v503_v36 = vmax.f32 %v403_v26, 0.0  ;;  %3441 = vmatmul.msk.f32.vlgmr.msra.gmra.mxu0 %vm45_vm1, %v3928_v27  ;;  %3446 = vmatmul.msk.f32.vlgmr.msra.gmra.mxu1 %vm45_vm1, %v3928_v27  ;;  %v504_v43 = vmax.f32 %v432_v35, 0.0 }
  0xc5   :  { %3451 = vmatmul.msk.f32.vlgmr.msra.gmra.mxu2 %vm45_vm1, %v3928_v27  ;;  %3456 = vmatmul.msk.f32.vlgmr.msra.gmra.mxu3 %vm45_vm1, %v3928_v27  ;;  %v546_v46 = vadd.f32 %v520_v34, %v519_v25 }
  0xc6   :  { %v526_v42 = vadd.f32 %v525_v37, %v503_v36  ;;  %3480 = vmatpush.msk.msra.mxu0 %vm54_vm0, %v1353_v32  ;;  %3490 = vmatpush.msk.msra.mxu2 %vm54_vm0, %v1355_v28 }
  0xc8   :  { %v460_v44 = vpop.f32.mrf.mxu2  ;;  %v489_v45 = vpop.f32.mrf.mxu3  ;;  %v527_v53 = vadd.f32 %v526_v42, %v504_v43 }
  0xc9   :  { %v461_v48 = vadd.f32 %v460_v44, %v4009_v41  ;;  %v490_v49 = vadd.f32 %v489_v45, %v4009_v41  ;;  %v405_v50 = vpop.f32.mrf.mxu0  ;;  %v434_v51 = vpop.f32.mrf.mxu1 }
  0xca   :  { %v406_v52 = vadd.f32 %v405_v50, %v4031_v58  ;;  %v435_v59 = vadd.f32 %v434_v51, %v4031_v58  ;;  %v1354_v51 = vld [vmem:[%s5341_s0 + $0x108] sm:$0xf] }
  0xcb   :  { %v505_v56 = vmax.f32 %v461_v48, 0.0  ;;  %v506_v57 = vmax.f32 %v490_v49, 0.0  ;;  %3485 = vmatpush.msk.msra.mxu1 %vm54_vm0, %v1354_v51 }
  0xcc   :  { %v509_v62 = vmax.f32 %v406_v52, 0.0  ;;  %3442 = vmatmul.msk.f32.gmra.mxu0 %vm45_vm1, %v3868_v21  ;;  %3447 = vmatmul.msk.f32.gmra.mxu1 %vm45_vm1, %v3868_v21  ;;  %v510_v55 = vmax.f32 %v435_v59, 0.0  ;;  %v1356_v52 = vld [vmem:[%s5341_s0 + $0x118] sm:$0xf] }
  0xcd   :  { %3452 = vmatmul.msk.f32.gmra.mxu2 %vm45_vm1, %v3868_v21  ;;  %3457 = vmatmul.msk.f32.gmra.mxu3 %vm45_vm1, %v3868_v21  ;;  %v528_v54 = vadd.f32 %v527_v53, %v505_v56 }
  0xce   :  { %v533_v0 = vadd.f32 %v532_v63, %v509_v62  ;;  %3495 = vmatpush.msk.msra.mxu3 %vm54_vm0, %v1356_v52 }
  0xcf   :  { %v529_v2 = vadd.f32 %v528_v54, %v506_v57 }
  0xd0   :  { %v463_v6 = vpop.f32.mrf.mxu2  ;;  %v492_v7 = vpop.f32.mrf.mxu3  ;;  %v534_v12 = vadd.f32 %v533_v0, %v510_v55 }
  0xd1   :  { %v464_v8 = vadd.f32 %v463_v6, %v4031_v58  ;;  %v493_v9 = vadd.f32 %v492_v7, %v4031_v58  ;;  %530 = vadd.xlane.f32.xlu2 %v529_v2  ;;  %v408_v4 = vpop.f32.mrf.mxu0  ;;  %v437_v10 = vpop.f32.mrf.mxu1 }
  0xd2   :  { %v409_v11 = vadd.f32 %v408_v4, %v4047_v1  ;;  %v438_v15 = vadd.f32 %v437_v10, %v4047_v1 }
  0xd3   :  { %v511_v13 = vmax.f32 %v464_v8, 0.0  ;;  %v512_v14 = vmax.f32 %v493_v9, 0.0 }
  0xd4   :  { %v515_v17 = vmax.f32 %v409_v11, 0.0  ;;  %3443 = vmatmul.msk.f32.gmra.mxu0 %vm45_vm1, %v3950_v30  ;;  %3448 = vmatmul.msk.f32.gmra.mxu1 %vm45_vm1, %v3950_v30  ;;  %v516_v23 = vmax.f32 %v438_v15, 0.0 }
  0xd5   :  { %3453 = vmatmul.msk.f32.gmra.mxu2 %vm45_vm1, %v3950_v30  ;;  %3458 = vmatmul.msk.f32.gmra.mxu3 %vm45_vm1, %v3950_v30  ;;  %v535_v20 = vadd.f32 %v534_v12, %v511_v13  ;;  %v1609_v12 = vld [vmem:[%s5341_s0] sm:$0xf0]  ;;  %v1611_v13 = vld [vmem:[%s5341_s0 + $0x10] sm:$0xf0] }
  0xd6   :  { %v540_v22 = vadd.f32 %v539_v16, %v515_v17  ;;  %v1623_v15 = vrot.slane %v1611_v13, 4 }
  0xd7   :  { %v536_v31 = vadd.f32 %v535_v20, %v512_v14  ;;  %v1621_v14 = vrot.slane %v1609_v12, 4 }
  0xd8   :  { %v466_v33 = vpop.f32.mrf.mxu2  ;;  %v495_v29 = vpop.f32.mrf.mxu3  ;;  %v541_v39 = vadd.f32 %v540_v22, %v516_v23 }
  0xd9   :  { %v467_v26 = vadd.f32 %v466_v33, %v4047_v1  ;;  %v496_v35 = vadd.f32 %v495_v29, %v4047_v1  ;;  %537 = vadd.xlane.f32.xlu2 %v536_v31  ;;  %v411_v36 = vpop.f32.mrf.mxu0  ;;  %v440_v37 = vpop.f32.mrf.mxu1  ;;  %v1610_v33 = vld [vmem:[%s5341_s0 + $0x8] sm:$0xf0]  ;;  %v1612_v29 = vld [vmem:[%s5341_s0 + $0x18] sm:$0xf0] }
  0xda   :  { %v412_v38 = vadd.f32 %v411_v36, %v4081_v40  ;;  %v441_v44 = vadd.f32 %v440_v37, %v4081_v40 }
  0xdb   :  { %v517_v42 = vmax.f32 %v467_v26, 0.0  ;;  %v518_v43 = vmax.f32 %v496_v35, 0.0  ;;  %v1622_v26 = vrot.slane %v1610_v33, 4  ;;  %v1624_v35 = vrot.slane %v1612_v29, 4 }
  0xdc   :  { %v521_v45 = vmax.f32 %v412_v38, 0.0  ;;  %3444 = vmatmul.msk.f32.gmra.mxu0 %vm45_vm1, %v3888_v24  ;;  %3449 = vmatmul.msk.f32.gmra.mxu1 %vm45_vm1, %v3888_v24  ;;  %v522_v49 = vmax.f32 %v441_v44, 0.0 }
  0xdd   :  { %3454 = vmatmul.msk.f32.gmra.mxu2 %vm45_vm1, %v3888_v24  ;;  %3459 = vmatmul.msk.f32.gmra.mxu3 %vm45_vm1, %v3888_v24  ;;  %v542_v47 = vadd.f32 %v541_v39, %v517_v42 }
  0xde   :  { %v547_v48 = vadd.f32 %v546_v46, %v521_v45 }
  0xdf   :  { %v543_v50 = vadd.f32 %v542_v47, %v518_v43 }
  0xe0   :  { %v469_v53 = vpop.f32.mrf.mxu2  ;;  %v498_v56 = vpop.f32.mrf.mxu3  ;;  %v548_v62 = vadd.f32 %v547_v48, %v522_v49 }
  0xe1   :  { %v470_v57 = vadd.f32 %v469_v53, %v4081_v40  ;;  %v499_v59 = vadd.f32 %v498_v56, %v4081_v40  ;;  %544 = vadd.xlane.f32.xlu2 %v543_v50  ;;  %v598_v60 = vpop.f32.mrf.mxu0  ;;  %v627_v61 = vpop.f32.mrf.mxu1 }
  0xe2   :  { %v599_v10 = vadd.f32 %v598_v60, %v4009_v41  ;;  %v628_v11 = vadd.f32 %v627_v61, %v4009_v41 }
  0xe3   :  { %v523_v63 = vmax.f32 %v470_v57, 0.0  ;;  %v524_v54 = vmax.f32 %v499_v59, 0.0 }
  0xe4   :  { %3461 = vmatmul.msk.f32.vlgmr.msrb.gmra.mxu0 %vm45_vm1, %v3928_v27  ;;  %3466 = vmatmul.msk.f32.vlgmr.msrb.gmra.mxu1 %vm45_vm1, %v3928_v27  ;;  %v755_v19 = vmax.f32 %v599_v10, 0.0  ;;  %v756_v20 = vmax.f32 %v628_v11, 0.0 }
  0xe5   :  { %3471 = vmatmul.msk.f32.vlgmr.msrb.gmra.mxu2 %vm45_vm1, %v3928_v27  ;;  %3476 = vmatmul.msk.f32.vlgmr.msrb.gmra.mxu3 %vm45_vm1, %v3928_v27  ;;  %v549_v0 = vadd.f32 %v548_v62, %v523_v63 }
  0xe6   :  { %3500 = vmatpush.msk.msrb.mxu0 %vm54_vm0, %v1621_v14  ;;  %3510 = vmatpush.msk.msrb.mxu2 %vm54_vm0, %v1623_v15  ;;  %v779_v32 = vadd.f32 %v756_v20, %v755_v19 }
  0xe7   :  { %v550_v55 = vadd.f32 %v549_v0, %v524_v54  ;;  %3505 = vmatpush.msk.msrb.mxu1 %vm54_vm0, %v1622_v26  ;;  %3515 = vmatpush.msk.msrb.mxu3 %vm54_vm0, %v1624_v35 }
  0xe8   :  { %v656_v2 = vpop.f32.mrf.mxu2  ;;  %v685_v5 = vpop.f32.mrf.mxu3 }
  0xe9   :  { %551 = vadd.xlane.f32.xlu2 %v550_v55  ;;  %v601_v3 = vpop.f32.mrf.mxu0  ;;  %v630_v6 = vpop.f32.mrf.mxu1  ;;  %v657_v16 = vadd.f32 %v656_v2, %v4009_v41  ;;  %v686_v28 = vadd.f32 %v685_v5, %v4009_v41 }
  0xea   :  { %v602_v25 = vadd.f32 %v601_v3, %v4031_v58  ;;  %v631_v34 = vadd.f32 %v630_v6, %v4031_v58 }
  0xeb   :  { %v757_v31 = vmax.f32 %v657_v16, 0.0  ;;  %v758_v42 = vmax.f32 %v686_v28, 0.0 }
  0xec   :  { %3462 = vmatmul.msk.f32.gmra.mxu0 %vm45_vm1, %v3868_v21  ;;  %3467 = vmatmul.msk.f32.gmra.mxu1 %vm45_vm1, %v3868_v21  ;;  %v761_v45 = vmax.f32 %v602_v25, 0.0  ;;  %v762_v46 = vmax.f32 %v631_v34, 0.0 }
  0xed   :  { %3472 = vmatmul.msk.f32.gmra.mxu2 %vm45_vm1, %v3868_v21  ;;  %3477 = vmatmul.msk.f32.gmra.mxu3 %vm45_vm1, %v3868_v21  ;;  %v780_v36 = vadd.f32 %v779_v32, %v757_v31 }
  0xee   :  { %v786_v56 = vadd.f32 %v762_v46, %v761_v45  ;;  %v1613_v45 = vld [vmem:[%s5341_s0 + $0x20] sm:$0xf0] }
  0xef   :  { %v781_v49 = vadd.f32 %v780_v36, %v758_v42 }
  0xf0   :  { %v659_v7 = vpop.f32.mrf.mxu2  ;;  %v688_v8 = vpop.f32.mrf.mxu3 }
  0xf1   :  { %v604_v9 = vpop.f32.mrf.mxu0  ;;  %v633_v4 = vpop.f32.mrf.mxu1  ;;  %v660_v37 = vadd.f32 %v659_v7, %v4031_v58  ;;  %v689_v57 = vadd.f32 %v688_v8, %v4031_v58 }
  0xf2   :  { %v605_v52 = vadd.f32 %v604_v9, %v4047_v1  ;;  %v634_v53 = vadd.f32 %v633_v4, %v4047_v1 }
  0xf3   :  { %v763_v50 = vmax.f32 %v660_v37, 0.0  ;;  %v764_v6 = vmax.f32 %v689_v57, 0.0  ;;  %v4337_v57 = vpop.permute.xlu2 %823 }
  0xf4   :  { %3463 = vmatmul.msk.f32.gmra.mxu0 %vm45_vm1, %v3950_v30  ;;  %3468 = vmatmul.msk.f32.gmra.mxu1 %vm45_vm1, %v3950_v30  ;;  %v767_v55 = vmax.f32 %v605_v52, 0.0  ;;  %v768_v2 = vmax.f32 %v634_v53, 0.0  ;;  %v1614_v52 = vld [vmem:[%s5341_s0 + $0x28] sm:$0xf0]  ;;  %v1870_v53 = vld [vmem:[%s5341_s0 + $0x38] sm:$0xf0] }
  0xf5   :  { %3473 = vmatmul.msk.f32.gmra.mxu2 %vm45_vm1, %v3950_v30  ;;  %3478 = vmatmul.msk.f32.gmra.mxu3 %vm45_vm1, %v3950_v30  ;;  %v787_v61 = vadd.f32 %v786_v56, %v763_v50 }
  0xf6   :  { %v793_v11 = vadd.f32 %v768_v2, %v767_v55 }
  0xf7   :  { %v788_v8 = vadd.f32 %v787_v61, %v764_v6  ;;  %v1882_v61 = vrot.slane %v1870_v53, 4 }
  0xf8   :  { %v662_v17 = vpop.f32.mrf.mxu2  ;;  %v691_v18 = vpop.f32.mrf.mxu3 }
  0xf9   :  { %v4241_v22 = vpop.f32.mrf.mxu0  ;;  %v4243_v23 = vpop.f32.mrf.mxu1  ;;  %v663_v62 = vadd.f32 %v662_v17, %v4047_v1  ;;  %v692_v4 = vadd.f32 %v691_v18, %v4047_v1 }
  0xfa   :  { %v608_v12 = vadd.f32 %v4241_v22, %v4081_v40  ;;  %v637_v13 = vadd.f32 %v4243_v23, %v4081_v40 }
  0xfb   :  { %v769_v9 = vmax.f32 %v663_v62, 0.0  ;;  %v770_v17 = vmax.f32 %v692_v4, 0.0 }
  0xfc   :  { %3464 = vmatmul.msk.f32.gmra.mxu0 %vm45_vm1, %v3888_v24  ;;  %3469 = vmatmul.msk.f32.gmra.mxu1 %vm45_vm1, %v3888_v24  ;;  %v774_v33 = vmax.f32 %v637_v13, 0.0 }
  0xfd   :  { %3474 = vmatmul.msk.f32.gmra.mxu2 %vm45_vm1, %v3888_v24  ;;  %3479 = vmatmul.msk.f32.gmra.mxu3 %vm45_vm1, %v3888_v24  ;;  %v794_v16 = vadd.f32 %v793_v11, %v769_v9  ;;  %v4358_v9 = vpop.permute.xlu0 %828 }
  0xff   :  { %v795_v23 = vadd.f32 %v794_v16, %v770_v17 }
 0x100   :  { %v665_v38 = vpop.f32.mrf.mxu2  ;;  %v4263_v39 = vpop.f32.mrf.mxu3 }
 0x101   :  { %v714_v43 = vpop.f32.mrf.mxu0  ;;  %v743_v44 = vpop.f32.mrf.mxu1  ;;  %v666_v18 = vadd.f32 %v665_v38, %v4081_v40  ;;  %v695_v35 = vadd.f32 %v4263_v39, %v4081_v40 }
 0x102   :  { %v715_v47 = vadd.f32 %v714_v43, %v4009_v41  ;;  %v744_v48 = vadd.f32 %v743_v44, %v4009_v41 }
 0x103   :  { %v775_v25 = vmax.f32 %v666_v18, 0.0 }
 0x104   :  { %v759_v51 = vmax.f32 %v715_v47, 0.0  ;;  %3481 = vmatmul.msk.f32.vlgmr.msra.gmra.mxu0 %vm45_vm1, %v3928_v27  ;;  %3486 = vmatmul.msk.f32.vlgmr.msra.gmra.mxu1 %vm45_vm1, %v3928_v27  ;;  %v760_v59 = vmax.f32 %v744_v48, 0.0  ;;  %v1625_v48 = vrot.slane %v1613_v45, 4 }
 0x105   :  { %3491 = vmatmul.msk.f32.vlgmr.msra.gmra.mxu2 %vm45_vm1, %v3928_v27  ;;  %3496 = vmatmul.msk.f32.vlgmr.msra.gmra.mxu3 %vm45_vm1, %v3928_v27 }
 0x106   :  { %v782_v60 = vadd.f32 %v781_v49, %v759_v51  ;;  %v776_v49 = vmax.f32 %v695_v35, 0.0  ;;  %3520 = vmatpush.msk.msra.mxu0 %vm54_vm0, %v1625_v48  ;;  %3535 = vmatpush.msk.msra.mxu3 %vm54_vm0, %v1882_v61 }
 0x108   :  { %v4281_v63 = vpop.f32.mrf.mxu2  ;;  %v4283_v54 = vpop.f32.mrf.mxu3  ;;  %v783_v0 = vadd.f32 %v782_v60, %v760_v59  ;;  %v1626_v60 = vrot.slane %v1614_v52, 4 }
 0x109   :  { %v717_v5 = vpop.f32.mrf.mxu0  ;;  %v746_v3 = vpop.f32.mrf.mxu1  ;;  %v885_v62 = vadd.f32 %v4281_v63, %v4337_v57 }
 0x10a   :  { %v718_v27 = vadd.f32 %v717_v5, %v4031_v58  ;;  %v747_v7 = vadd.f32 %v746_v3, %v4031_v58  ;;  %784 = vadd.xlane.f32.xlu2 %v783_v0  ;;  %v914_v0 = vadd.f32 %v4283_v54, %v4337_v57  ;;  %3525 = vmatpush.msk.msra.mxu1 %vm54_vm0, %v1626_v60  ;;  %v4404_v52 = vpop.permute.xlu0 %838 }
 0x10c   :  { %v765_v10 = vmax.f32 %v718_v27, 0.0  ;;  %3482 = vmatmul.msk.f32.gmra.mxu0 %vm45_vm1, %v3868_v21  ;;  %3487 = vmatmul.msk.f32.gmra.mxu1 %vm45_vm1, %v3868_v21  ;;  %v766_v14 = vmax.f32 %v747_v7, 0.0  ;;  %v1041_v7 = vmax.f32 %v885_v62, 0.0  ;;  %v4411_v62 = vld [vmem:[%s5342_s1 + $0x10] sm:$0xff] }
 0x10d   :  { %3492 = vmatmul.msk.f32.gmra.mxu2 %vm45_vm1, %v3868_v21  ;;  %3497 = vmatmul.msk.f32.gmra.mxu3 %vm45_vm1, %v3868_v21  ;;  %v773_v21 = vmax.f32 %v608_v12, 0.0 }
 0x10e   :  { %v789_v15 = vadd.f32 %v788_v8, %v765_v10  ;;  %v4365_v10 = vld [vmem:[%s5342_s1] sm:$0xff] }
 0x10f   :  { %v800_v26 = vadd.f32 %v774_v33, %v773_v21  ;;  %v4381_v33 = vpop.permute.xlu1 %833 }
 0x110   :  { %v4301_v19 = vpop.f32.mrf.mxu2  ;;  %v4303_v20 = vpop.f32.mrf.mxu3  ;;  %v790_v31 = vadd.f32 %v789_v15, %v766_v14 }
 0x111   :  { %v720_v32 = vpop.f32.mrf.mxu0  ;;  %v749_v28 = vpop.f32.mrf.mxu1  ;;  %v801_v38 = vadd.f32 %v800_v26, %v775_v25  ;;  %v888_v54 = vadd.f32 %v4301_v19, %v4358_v9  ;;  %v917_v11 = vadd.f32 %v4303_v20, %v4358_v9  ;;  %v4390_v26 = vld [vmem:[%s5342_s1 + $0x8] sm:$0xff] }
 0x112   :  { %v721_v22 = vadd.f32 %v720_v32, %v4047_v1  ;;  %v750_v29 = vadd.f32 %v749_v28, %v4047_v1  ;;  %791 = vadd.xlane.f32.xlu2 %v790_v31 }
 0x113   :  { %v802_v56 = vadd.f32 %v801_v38, %v776_v49  ;;  %v1047_v15 = vmax.f32 %v888_v54, 0.0  ;;  %v1048_v18 = vmax.f32 %v917_v11, 0.0 }
 0x114   :  { %v771_v34 = vmax.f32 %v721_v22, 0.0  ;;  %3483 = vmatmul.msk.f32.gmra.mxu0 %vm45_vm1, %v3950_v30  ;;  %3488 = vmatmul.msk.f32.gmra.mxu1 %vm45_vm1, %v3950_v30  ;;  %v772_v36 = vmax.f32 %v750_v29, 0.0 }
 0x115   :  { %3493 = vmatmul.msk.f32.gmra.mxu2 %vm45_vm1, %v3950_v30  ;;  %3498 = vmatmul.msk.f32.gmra.mxu3 %vm45_vm1, %v3950_v30  ;;  %v1869_v30 = vld [vmem:[%s5341_s0 + $0x30] sm:$0xf0]  ;;  %v1072_v35 = vadd.f32 %v1048_v18, %v1047_v15 }
 0x116   :  { %v796_v37 = vadd.f32 %v795_v23, %v771_v34  ;;  %v1881_v39 = vrot.slane %v1869_v30, 4 }
 0x118   :  { %v4317_v42 = vpop.f32.mrf.mxu2  ;;  %v4319_v43 = vpop.f32.mrf.mxu3  ;;  %v797_v44 = vadd.f32 %v796_v37, %v772_v36  ;;  %3530 = vmatpush.msk.msra.mxu2 %vm54_vm0, %v1881_v39 }
 0x119   :  { %v723_v46 = vpop.f32.mrf.mxu0  ;;  %v752_v47 = vpop.f32.mrf.mxu1  ;;  %v891_v23 = vadd.f32 %v4317_v42, %v4381_v33  ;;  %v920_v25 = vadd.f32 %v4319_v43, %v4381_v33 }
 0x11a   :  { %v724_v50 = vadd.f32 %v723_v46, %v4081_v40  ;;  %v753_v51 = vadd.f32 %v752_v47, %v4081_v40  ;;  %798 = vadd.xlane.f32.xlu0 %v797_v44 }
 0x11b   :  { %v1053_v44 = vmax.f32 %v891_v23, 0.0  ;;  %v1054_v45 = vmax.f32 %v920_v25, 0.0  ;;  %v1872_v25 = vld [vmem:[%s5341_s0 + $0x48] sm:$0xf0] }
 0x11c   :  { %v777_v59 = vmax.f32 %v724_v50, 0.0  ;;  %3484 = vmatmul.msk.f32.gmra.mxu0 %vm45_vm1, %v3888_v24  ;;  %3489 = vmatmul.msk.f32.gmra.mxu1 %vm45_vm1, %v3888_v24  ;;  %v778_v55 = vmax.f32 %v753_v51, 0.0 }
 0x11d   :  { %3494 = vmatmul.msk.f32.gmra.mxu2 %vm45_vm1, %v3888_v24  ;;  %3499 = vmatmul.msk.f32.gmra.mxu3 %vm45_vm1, %v3888_v24  ;;  %v1042_v24 = vmax.f32 %v914_v0, 0.0 }
 0x11e   :  { %v803_v2 = vadd.f32 %v802_v56, %v777_v59  ;;  %v1079_v59 = vadd.f32 %v1054_v45, %v1053_v44 }
 0x11f   :  { %v1065_v12 = vadd.f32 %v1042_v24, %v1041_v7  ;;  %v1871_v7 = vld [vmem:[%s5341_s0 + $0x40] sm:$0xf0] }
 0x120   :  { %v4353_v5 = vpop.f32.mrf.mxu2  ;;  %v4355_v3 = vpop.f32.mrf.mxu3  ;;  %v804_v6 = vadd.f32 %v803_v2, %v778_v55  ;;  %v1883_v54 = vrot.slane %v1871_v7, 4 }
 0x121   :  { %v942_v27 = vpop.f32.mrf.mxu0  ;;  %v971_v8 = vpop.f32.mrf.mxu1  ;;  %v894_v60 = vadd.f32 %v4353_v5, %v4404_v52  ;;  %v923_v0 = vadd.f32 %v4355_v3, %v4404_v52  ;;  %v1873_v3 = vld [vmem:[%s5341_s0 + $0x50] sm:$0xf0] }
 0x122   :  { %v943_v63 = vadd.f32 %v942_v27, %v4337_v57  ;;  %805 = vadd.xlane.f32.xlu1 %v804_v6  ;;  %v972_v13 = vadd.f32 %v971_v8, %v4337_v57 }
 0x123   :  { %v1059_v24 = vmax.f32 %v894_v60, 0.0  ;;  %v1060_v11 = vmax.f32 %v923_v0, 0.0 }
 0x124   :  { %v1043_v4 = vmax.f32 %v943_v63, 0.0  ;;  %3501 = vmatmul.msk.f32.vlgmr.msrb.gmra.mxu0 %vm45_vm1, %v4365_v10  ;;  %3506 = vmatmul.msk.f32.vlgmr.msrb.gmra.mxu1 %vm45_vm1, %v4365_v10  ;;  %v1044_v19 = vmax.f32 %v972_v13, 0.0 }
 0x125   :  { %3511 = vmatmul.msk.f32.vlgmr.msrb.gmra.mxu2 %vm45_vm1, %v4365_v10  ;;  %3516 = vmatmul.msk.f32.vlgmr.msrb.gmra.mxu3 %vm45_vm1, %v4365_v10 }
 0x126   :  { %v1066_v14 = vadd.f32 %v1065_v12, %v1043_v4  ;;  %v1885_v4 = vrot.slane %v1873_v3, 4  ;;  %3540 = vmatpush.msk.msrb.mxu0 %vm54_vm0, %v1883_v54 }
 0x128   :  { %v1000_v16 = vpop.f32.mrf.mxu2  ;;  %v1029_v17 = vpop.f32.mrf.mxu3  ;;  %v1067_v22 = vadd.f32 %v1066_v14, %v1044_v19  ;;  %3550 = vmatpush.msk.msrb.mxu2 %vm54_vm0, %v1885_v4 }
 0x129   :  { %v1001_v31 = vadd.f32 %v1000_v16, %v4337_v57  ;;  %v1030_v32 = vadd.f32 %v1029_v17, %v4337_v57  ;;  %v945_v20 = vpop.f32.mrf.mxu0  ;;  %v974_v28 = vpop.f32.mrf.mxu1 }
 0x12a   :  { %v946_v21 = vadd.f32 %v945_v20, %v4358_v9  ;;  %v975_v37 = vadd.f32 %v974_v28, %v4358_v9  ;;  %v1086_v20 = vadd.f32 %v1060_v11, %v1059_v24 }
 0x12b   :  { %v1045_v29 = vmax.f32 %v1001_v31, 0.0  ;;  %v1046_v36 = vmax.f32 %v1030_v32, 0.0  ;;  %v4438_v32 = vld [vmem:[%s5342_s1 + $0x18] sm:$0xff] }
 0x12c   :  { %v1049_v34 = vmax.f32 %v946_v21, 0.0  ;;  %3502 = vmatmul.msk.f32.gmra.mxu0 %vm45_vm1, %v4390_v26  ;;  %3507 = vmatmul.msk.f32.gmra.mxu1 %vm45_vm1, %v4390_v26  ;;  %v1050_v47 = vmax.f32 %v975_v37, 0.0  ;;  %v1884_v37 = vrot.slane %v1872_v25, 4 }
 0x12d   :  { %3512 = vmatmul.msk.f32.gmra.mxu2 %vm45_vm1, %v4390_v26  ;;  %3517 = vmatmul.msk.f32.gmra.mxu3 %vm45_vm1, %v4390_v26  ;;  %v1068_v38 = vadd.f32 %v1067_v22, %v1045_v29 }
 0x12e   :  { %v1073_v42 = vadd.f32 %v1072_v35, %v1049_v34  ;;  %v1874_v34 = vld [vmem:[%s5341_s0 + $0x58] sm:$0xf0]  ;;  %3545 = vmatpush.msk.msrb.mxu1 %vm54_vm0, %v1884_v37 }
 0x12f   :  { %v1069_v43 = vadd.f32 %v1068_v38, %v1046_v36  ;;  %v1886_v38 = vrot.slane %v1874_v34, 4 }
 0x130   :  { %v1003_v30 = vpop.f32.mrf.mxu2  ;;  %v1032_v46 = vpop.f32.mrf.mxu3  ;;  %v1074_v53 = vadd.f32 %v1073_v42, %v1050_v47 }
 0x131   :  { %v1004_v48 = vadd.f32 %v1003_v30, %v4358_v9  ;;  %v1033_v39 = vadd.f32 %v1032_v46, %v4358_v9  ;;  %1070 = vadd.xlane.f32.xlu2 %v1069_v43  ;;  %v948_v49 = vpop.f32.mrf.mxu0  ;;  %v977_v50 = vpop.f32.mrf.mxu1  ;;  %3555 = vmatpush.msk.msrb.mxu3 %vm54_vm0, %v1886_v38 }
 0x132   :  { %v949_v51 = vadd.f32 %v948_v49, %v4381_v33  ;;  %v978_v2 = vadd.f32 %v977_v50, %v4381_v33 }
 0x133   :  { %v1051_v56 = vmax.f32 %v1004_v48, 0.0  ;;  %v1052_v55 = vmax.f32 %v1033_v39, 0.0 }
 0x134   :  { %v1055_v61 = vmax.f32 %v949_v51, 0.0  ;;  %3503 = vmatmul.msk.f32.gmra.mxu0 %vm45_vm1, %v4411_v62  ;;  %3508 = vmatmul.msk.f32.gmra.mxu1 %vm45_vm1, %v4411_v62  ;;  %v1056_v12 = vmax.f32 %v978_v2, 0.0  ;;  %v2129_v2 = vld [vmem:[%s5341_s0 + $0x60] sm:$0xf0] }
 0x135   :  { %3513 = vmatmul.msk.f32.gmra.mxu2 %vm45_vm1, %v4411_v62  ;;  %3518 = vmatmul.msk.f32.gmra.mxu3 %vm45_vm1, %v4411_v62  ;;  %v1075_v5 = vadd.f32 %v1074_v53, %v1051_v56 }
 0x136   :  { %v1080_v6 = vadd.f32 %v1079_v59, %v1055_v61  ;;  %v4471_v59 = vpop.xlane.xlu2 %276 }
 0x137   :  { %v1076_v27 = vadd.f32 %v1075_v5, %v1052_v55 }
 0x138   :  { %v1006_v8 = vpop.f32.mrf.mxu2  ;;  %v1035_v63 = vpop.f32.mrf.mxu3  ;;  %v1081_v18 = vadd.f32 %v1080_v6, %v1056_v12 }
 0x139   :  { %v1007_v13 = vadd.f32 %v1006_v8, %v4381_v33  ;;  %v1036_v14 = vadd.f32 %v1035_v63, %v4381_v33  ;;  %1077 = vadd.xlane.f32.xlu1 %v1076_v27  ;;  %v951_v15 = vpop.f32.mrf.mxu0  ;;  %v980_v16 = vpop.f32.mrf.mxu1  ;;  %v2141_v27 = vrot.slane %v2129_v2, 4 }
 0x13a   :  { %v952_v17 = vadd.f32 %v951_v15, %v4404_v52  ;;  %v981_v21 = vadd.f32 %v980_v16, %v4404_v52  ;;  %v2130_v16 = vld [vmem:[%s5341_s0 + $0x68] sm:$0xf0] }
 0x13b   :  { %v1057_v19 = vmax.f32 %v1007_v13, 0.0  ;;  %v1058_v28 = vmax.f32 %v1036_v14, 0.0 }
 0x13c   :  { %v1061_v31 = vmax.f32 %v952_v17, 0.0  ;;  %3504 = vmatmul.msk.f32.gmra.mxu0 %vm45_vm1, %v4438_v32  ;;  %3509 = vmatmul.msk.f32.gmra.mxu1 %vm45_vm1, %v4438_v32  ;;  %v1062_v42 = vmax.f32 %v981_v21, 0.0 }
 0x13d   :  { %3514 = vmatmul.msk.f32.gmra.mxu2 %vm45_vm1, %v4438_v32  ;;  %3519 = vmatmul.msk.f32.gmra.mxu3 %vm45_vm1, %v4438_v32  ;;  %v1082_v22 = vadd.f32 %v1081_v18, %v1057_v19  ;;  %v2142_v18 = vrot.slane %v2130_v16, 4 }
 0x13e   :  { %v1087_v29 = vadd.f32 %v1086_v20, %v1061_v31  ;;  %v4490_v7 = vpop.xlane.xlu2 %283 }
 0x13f   :  { %v1083_v23 = vadd.f32 %v1082_v22, %v1058_v28 }
 0x140   :  { %v1009_v35 = vpop.f32.mrf.mxu2  ;;  %v1038_v36 = vpop.f32.mrf.mxu3  ;;  %v1088_v46 = vadd.f32 %v1087_v29, %v1062_v42 }
 0x141   :  { %v1010_v43 = vadd.f32 %v1009_v35, %v4404_v52  ;;  %v1039_v44 = vadd.f32 %v1038_v36, %v4404_v52  ;;  %1084 = vadd.xlane.f32.xlu0 %v1083_v23  ;;  %v1138_v45 = vpop.f32.mrf.mxu0  ;;  %v1167_v30 = vpop.f32.mrf.mxu1  ;;  %v2131_v35 = vld [vmem:[%s5341_s0 + $0x70] sm:$0xf0]  ;;  %v2132_v36 = vld [vmem:[%s5341_s0 + $0x78] sm:$0xf0] }
 0x142   :  { %v1139_v5 = vadd.f32 %v1138_v45, %v4337_v57  ;;  %v1168_v6 = vadd.f32 %v1167_v30, %v4337_v57  ;;  %v2143_v42 = vrot.slane %v2131_v35, 4 }
 0x143   :  { %v1063_v47 = vmax.f32 %v1010_v43, 0.0  ;;  %v1064_v48 = vmax.f32 %v1039_v44, 0.0  ;;  %v2144_v43 = vrot.slane %v2132_v36, 4 }
 0x144   :  { %3521 = vmatmul.msk.f32.vlgmr.msra.gmra.mxu0 %vm45_vm1, %v4365_v10  ;;  %3526 = vmatmul.msk.f32.vlgmr.msra.gmra.mxu1 %vm45_vm1, %v4365_v10  ;;  %v1295_v4 = vmax.f32 %v1139_v5, 0.0  ;;  %v1296_v11 = vmax.f32 %v1168_v6, 0.0 }
 0x145   :  { %3531 = vmatmul.msk.f32.vlgmr.msra.gmra.mxu2 %vm45_vm1, %v4365_v10  ;;  %3536 = vmatmul.msk.f32.vlgmr.msra.gmra.mxu3 %vm45_vm1, %v4365_v10  ;;  %v1089_v39 = vadd.f32 %v1088_v46, %v1063_v47 }
 0x146   :  { %3560 = vmatpush.msk.msra.mxu0 %vm54_vm0, %v2141_v27  ;;  %v1319_v17 = vadd.f32 %v1296_v11, %v1295_v4  ;;  %v4514_v19 = vpop.xlane.xlu2 %530  ;;  %3565 = vmatpush.msk.msra.mxu1 %vm54_vm0, %v2142_v18 }
 0x147   :  { %v1090_v49 = vadd.f32 %v1089_v39, %v1064_v48  ;;  %3570 = vmatpush.msk.msra.mxu2 %vm54_vm0, %v2143_v42  ;;  %3575 = vmatpush.msk.msra.mxu3 %vm54_vm0, %v2144_v43 }
 0x148   :  { %v1196_v50 = vpop.f32.mrf.mxu2  ;;  %v1225_v51 = vpop.f32.mrf.mxu3 }
 0x149   :  { %1091 = vadd.xlane.f32.xlu2 %v1090_v49  ;;  %v1141_v53 = vpop.f32.mrf.mxu0  ;;  %v1170_v56 = vpop.f32.mrf.mxu1  ;;  %v1197_v3 = vadd.f32 %v1196_v50, %v4337_v57  ;;  %v1226_v13 = vadd.f32 %v1225_v51, %v4337_v57 }
 0x14a   :  { %v1142_v14 = vadd.f32 %v1141_v53, %v4358_v9  ;;  %v1171_v15 = vadd.f32 %v1170_v56, %v4358_v9 }
 0x14b   :  { %v1297_v12 = vmax.f32 %v1197_v3, 0.0  ;;  %v1298_v20 = vmax.f32 %v1226_v13, 0.0 }
 0x14c   :  { %3522 = vmatmul.msk.f32.gmra.mxu0 %vm45_vm1, %v4390_v26  ;;  %3527 = vmatmul.msk.f32.gmra.mxu1 %vm45_vm1, %v4390_v26  ;;  %v1301_v29 = vmax.f32 %v1142_v14, 0.0  ;;  %v1302_v23 = vmax.f32 %v1171_v15, 0.0 }
 0x14d   :  { %3532 = vmatmul.msk.f32.gmra.mxu2 %vm45_vm1, %v4390_v26  ;;  %3537 = vmatmul.msk.f32.gmra.mxu3 %vm45_vm1, %v4390_v26  ;;  %v1320_v31 = vadd.f32 %v1319_v17, %v1297_v12 }
 0x14e   :  { %v1326_v48 = vadd.f32 %v1302_v23, %v1301_v29  ;;  %v4548_v4 = vpop.xlane.xlu2 %537 }
 0x14f   :  { %v1321_v44 = vadd.f32 %v1320_v31, %v1298_v20 }
 0x150   :  { %v1199_v60 = vpop.f32.mrf.mxu2  ;;  %v1228_v61 = vpop.f32.mrf.mxu3 }
 0x151   :  { %v1144_v0 = vpop.f32.mrf.mxu0  ;;  %v1173_v55 = vpop.f32.mrf.mxu1  ;;  %v1200_v28 = vadd.f32 %v1199_v60, %v4358_v9  ;;  %v1229_v39 = vadd.f32 %v1228_v61, %v4358_v9 }
 0x152   :  { %v1145_v46 = vadd.f32 %v1144_v0, %v4381_v33  ;;  %v1174_v47 = vadd.f32 %v1173_v55, %v4381_v33 }
 0x153   :  { %v1303_v45 = vmax.f32 %v1200_v28, 0.0  ;;  %v1304_v27 = vmax.f32 %v1229_v39, 0.0 }
 0x154   :  { %3523 = vmatmul.msk.f32.gmra.mxu0 %vm45_vm1, %v4411_v62  ;;  %3528 = vmatmul.msk.f32.gmra.mxu1 %vm45_vm1, %v4411_v62  ;;  %v1307_v55 = vmax.f32 %v1145_v46, 0.0  ;;  %v1308_v2 = vmax.f32 %v1174_v47, 0.0 }
 0x155   :  { %3533 = vmatmul.msk.f32.gmra.mxu2 %vm45_vm1, %v4411_v62  ;;  %3538 = vmatmul.msk.f32.gmra.mxu3 %vm45_vm1, %v4411_v62  ;;  %v1327_v51 = vadd.f32 %v1326_v48, %v1303_v45 }
 0x156   :  { %v1333_v13 = vadd.f32 %v1308_v2, %v1307_v55  ;;  %v4575_v43 = vpop.xlane.xlu2 %544 }
 0x157   :  { %v1328_v11 = vadd.f32 %v1327_v51, %v1304_v27 }
 0x158   :  { %v1202_v24 = vpop.f32.mrf.mxu2  ;;  %v4493_v8 = vpop.f32.mrf.mxu3 }
 0x159   :  { %v4496_v63 = vpop.f32.mrf.mxu0  ;;  %v4498_v54 = vpop.f32.mrf.mxu1  ;;  %v1203_v53 = vadd.f32 %v1202_v24, %v4381_v33  ;;  %v1232_v14 = vadd.f32 %v4493_v8, %v4381_v33 }
 0x15a   :  { %v1148_v15 = vadd.f32 %v4496_v63, %v4404_v52  ;;  %v1177_v16 = vadd.f32 %v4498_v54, %v4404_v52  ;;  %v3697_v54 = vmov 0  }
 0x15b   :  { %v1309_v12 = vmax.f32 %v1203_v53, 0.0  ;;  %v1310_v23 = vmax.f32 %v1232_v14, 0.0  ;;  %3685 = vset.pattern.permute.xlu2 %v3697_v54  ;;  %3686 = vset.pattern.permute.xlu1 %v3697_v54 }
 0x15c   :  { %3524 = vmatmul.msk.f32.gmra.mxu0 %vm45_vm1, %v4438_v32  ;;  %3529 = vmatmul.msk.f32.gmra.mxu1 %vm45_vm1, %v4438_v32  ;;  %v1313_v35 = vmax.f32 %v1148_v15, 0.0  ;;  %v1314_v36 = vmax.f32 %v1177_v16, 0.0 }
 0x15d   :  { %3534 = vmatmul.msk.f32.gmra.mxu2 %vm45_vm1, %v4438_v32  ;;  %3539 = vmatmul.msk.f32.gmra.mxu3 %vm45_vm1, %v4438_v32  ;;  %v1334_v31 = vadd.f32 %v1333_v13, %v1309_v12 }
 0x15e   :  { %3687 = vset.pattern.permute.xlu0 %v3697_v54  ;;  %v4609_v13 = vpop.xlane.xlu2 %551 }
 0x160   :  { %v1205_v21 = vpop.f32.mrf.mxu2  ;;  %v4517_v22 = vpop.f32.mrf.mxu3 }
 0x161   :  { %v1254_v25 = vpop.f32.mrf.mxu0  ;;  %v1283_v34 = vpop.f32.mrf.mxu1  ;;  %v1206_v20 = vadd.f32 %v1205_v21, %v4404_v52  ;;  %v1335_v21 = vadd.f32 %v1334_v31, %v1310_v23  ;;  %v1235_v45 = vadd.f32 %v4517_v22, %v4404_v52  ;;  %v2393_v31 = vld [vmem:[%s5341_s0 + $0x90] sm:$0xf0] }
 0x162   :  { %v1255_v37 = vadd.f32 %v1254_v25, %v4337_v57  ;;  %v1284_v38 = vadd.f32 %v1283_v34, %v4337_v57  ;;  %v2405_v23 = vrot.slane %v2393_v31, 4 }
 0x163   :  { %v1316_v55 = vmax.f32 %v1235_v45, 0.0 }
 0x164   :  { %v1299_v30 = vmax.f32 %v1255_v37, 0.0  ;;  %3541 = vmatmul.msk.f32.vlgmr.msrb.gmra.mxu0 %vm45_vm1, %v4365_v10  ;;  %3546 = vmatmul.msk.f32.vlgmr.msrb.gmra.mxu1 %vm45_vm1, %v4365_v10  ;;  %v1300_v49 = vmax.f32 %v1284_v38, 0.0  ;;  %v1315_v38 = vmax.f32 %v1206_v20, 0.0  ;;  %v2394_v20 = vld [vmem:[%s5341_s0 + $0x98] sm:$0xf0] }
 0x165   :  { %3551 = vmatmul.msk.f32.vlgmr.msrb.gmra.mxu2 %vm45_vm1, %v4365_v10  ;;  %3556 = vmatmul.msk.f32.vlgmr.msrb.gmra.mxu3 %vm45_vm1, %v4365_v10 }
 0x166   :  { %v1322_v50 = vadd.f32 %v1321_v44, %v1299_v30  ;;  %v1340_v44 = vadd.f32 %v1314_v36, %v1313_v35  ;;  %3590 = vmatpush.msk.msrb.mxu2 %vm54_vm0, %v2405_v23 }
 0x168   :  { %v4542_v56 = vpop.f32.mrf.mxu2  ;;  %v4544_v60 = vpop.f32.mrf.mxu3  ;;  %v1323_v0 = vadd.f32 %v1322_v50, %v1300_v49  ;;  %v1341_v47 = vadd.f32 %v1340_v44, %v1315_v38  ;;  %v2133_v50 = vld [vmem:[%s5341_s0 + $0x80] sm:$0xf0] }
 0x169   :  { %v1257_v5 = vpop.f32.mrf.mxu0  ;;  %v1286_v6 = vpop.f32.mrf.mxu1 }
 0x16a   :  { %v1258_v61 = vadd.f32 %v1257_v5, %v4358_v9  ;;  %v1287_v3 = vadd.f32 %v1286_v6, %v4358_v9  ;;  %1324 = vadd.xlane.f32.xlu1 %v1323_v0  ;;  %v2145_v0 = vrot.slane %v2133_v50, 4  ;;  %v2134_v5 = vld [vmem:[%s5341_s0 + $0x88] sm:$0xf0]  ;;  %v1342_v6 = vadd.f32 %v1341_v47, %v1316_v55 }
 0x16c   :  { %v1305_v24 = vmax.f32 %v1258_v61, 0.0  ;;  %3542 = vmatmul.msk.f32.gmra.mxu0 %vm45_vm1, %v4390_v26  ;;  %3547 = vmatmul.msk.f32.gmra.mxu1 %vm45_vm1, %v4390_v26  ;;  %v1306_v17 = vmax.f32 %v1287_v3, 0.0  ;;  %v2146_v61 = vrot.slane %v2134_v5, 4  ;;  %v1393_v3 = vadd.f32 %v4542_v56, %v4337_v57 }
 0x16d   :  { %3552 = vmatmul.msk.f32.gmra.mxu2 %vm45_vm1, %v4390_v26  ;;  %3557 = vmatmul.msk.f32.gmra.mxu3 %vm45_vm1, %v4390_v26 }
 0x16e   :  { %v1329_v18 = vadd.f32 %v1328_v11, %v1305_v24  ;;  %3580 = vmatpush.msk.msrb.mxu0 %vm54_vm0, %v2145_v0  ;;  %v1422_v11 = vadd.f32 %v4544_v60, %v4337_v57  ;;  %3585 = vmatpush.msk.msrb.mxu1 %vm54_vm0, %v2146_v61  ;;  %v1549_v16 = vmax.f32 %v1393_v3, 0.0  ;;  %v2395_v3 = vld [vmem:[%s5341_s0 + $0xa0] sm:$0xf0] }
 0x170   :  { %v4565_v28 = vpop.f32.mrf.mxu2  ;;  %v4567_v8 = vpop.f32.mrf.mxu3  ;;  %v1330_v29 = vadd.f32 %v1329_v18, %v1306_v17  ;;  %v1550_v17 = vmax.f32 %v1422_v11, 0.0 }
 0x171   :  { %v1260_v25 = vpop.f32.mrf.mxu0  ;;  %v1289_v34 = vpop.f32.mrf.mxu1 }
 0x172   :  { %v1261_v63 = vadd.f32 %v1260_v25, %v4381_v33  ;;  %v1290_v37 = vadd.f32 %v1289_v34, %v4381_v33  ;;  %1331 = vadd.xlane.f32.xlu0 %v1330_v29  ;;  %v2406_v25 = vrot.slane %v2394_v20, 4  ;;  %v1573_v35 = vadd.f32 %v1550_v17, %v1549_v16 }
 0x174   :  { %v1311_v42 = vmax.f32 %v1261_v63, 0.0  ;;  %3543 = vmatmul.msk.f32.gmra.mxu0 %vm45_vm1, %v4411_v62  ;;  %3548 = vmatmul.msk.f32.gmra.mxu1 %vm45_vm1, %v4411_v62  ;;  %v1312_v30 = vmax.f32 %v1290_v37, 0.0 }
 0x175   :  { %3553 = vmatmul.msk.f32.gmra.mxu2 %vm45_vm1, %v4411_v62  ;;  %3558 = vmatmul.msk.f32.gmra.mxu3 %vm45_vm1, %v4411_v62 }
 0x176   :  { %v1336_v46 = vadd.f32 %v1335_v21, %v1311_v42  ;;  %3595 = vmatpush.msk.msrb.mxu3 %vm54_vm0, %v2406_v25 }
 0x178   :  { %v4583_v48 = vpop.f32.mrf.mxu2  ;;  %v4585_v39 = vpop.f32.mrf.mxu3  ;;  %v1337_v49 = vadd.f32 %v1336_v46, %v1312_v30  ;;  %v553_v46 = vadd.f32 %v4514_v19, %v4471_v59 }
 0x179   :  { %v1263_v51 = vpop.f32.mrf.mxu0  ;;  %v1292_v53 = vpop.f32.mrf.mxu1 }
 0x17a   :  { %v1264_v2 = vadd.f32 %v1263_v51, %v4404_v52  ;;  %v1293_v22 = vadd.f32 %v1292_v53, %v4404_v52  ;;  %1338 = vadd.xlane.f32.xlu2 %v1337_v49 }
 0x17c   :  { %v1317_v27 = vmax.f32 %v1264_v2, 0.0  ;;  %3544 = vmatmul.msk.f32.gmra.mxu0 %vm45_vm1, %v4438_v32  ;;  %3549 = vmatmul.msk.f32.gmra.mxu1 %vm45_vm1, %v4438_v32  ;;  %v1318_v12 = vmax.f32 %v1293_v22, 0.0 }
 0x17d   :  { %3554 = vmatmul.msk.f32.gmra.mxu2 %vm45_vm1, %v4438_v32  ;;  %3559 = vmatmul.msk.f32.gmra.mxu3 %vm45_vm1, %v4438_v32  ;;  %v785_v63 = vpop.xlane.xlu2 %784 }
 0x17e   :  { %v1343_v24 = vadd.f32 %v1342_v6, %v1317_v27  ;;  %v807_v50 = vadd.f32 %v785_v63, %v553_v46  ;;  %v554_v6 = vadd.f32 %v4548_v4, %v4490_v7  ;;  %v291_v27 = vpop.xlane.xlu0 %290  ;;  %v2407_v4 = vrot.slane %v2395_v3, 4 }
 0x17f   :  { %v555_v17 = vadd.f32 %v4575_v43, %v291_v27  ;;  %v2398_v43 = vld [vmem:[%s5341_s0 + $0xb8] sm:$0xf0] }
 0x180   :  { %v4611_v14 = vpop.f32.mrf.mxu2  ;;  %v4613_v15 = vpop.f32.mrf.mxu3  ;;  %v1344_v56 = vadd.f32 %v1343_v24, %v1318_v12  ;;  %v811_v55 = vmul.f32 0.00043402778, %v807_v50 }
 0x181   :  { %v1450_v60 = vpop.f32.mrf.mxu0  ;;  %v1479_v18 = vpop.f32.mrf.mxu1 }
 0x182   :  { %v1451_v29 = vadd.f32 %v1450_v60, %v4337_v57  ;;  %1345 = vadd.xlane.f32.xlu1 %v1344_v56  ;;  %v1480_v36 = vadd.f32 %v1479_v18, %v4337_v57  ;;  %v2396_v60 = vld [vmem:[%s5341_s0 + $0xa8] sm:$0xf0] }
 0x184   :  { %v1551_v34 = vmax.f32 %v1451_v29, 0.0  ;;  %3561 = vmatmul.msk.f32.vlgmr.msra.gmra.mxu0 %vm45_vm1, %v4365_v10  ;;  %3566 = vmatmul.msk.f32.vlgmr.msra.gmra.mxu1 %vm45_vm1, %v4365_v10  ;;  %v1552_v38 = vmax.f32 %v1480_v36, 0.0  ;;  %v2408_v29 = vrot.slane %v2396_v60, 4 }
 0x185   :  { %3571 = vmatmul.msk.f32.vlgmr.msra.gmra.mxu2 %vm45_vm1, %v4365_v10  ;;  %3576 = vmatmul.msk.f32.vlgmr.msra.gmra.mxu3 %vm45_vm1, %v4365_v10  ;;  %v792_v5 = vpop.xlane.xlu2 %791 }
 0x186   :  { %v1574_v37 = vadd.f32 %v1573_v35, %v1551_v34  ;;  %v808_v61 = vadd.f32 %v792_v5, %v554_v6  ;;  %3600 = vmatpush.msk.msra.mxu0 %vm54_vm0, %v2407_v4  ;;  %3605 = vmatpush.msk.msra.mxu1 %vm54_vm0, %v2408_v29  ;;  %v2397_v34 = vld [vmem:[%s5341_s0 + $0xb0] sm:$0xf0] }
 0x187   :  { %v2409_v63 = vrot.slane %v2397_v34, 4 }
 0x188   :  { %v1508_v54 = vpop.f32.mrf.mxu2  ;;  %v1537_v21 = vpop.f32.mrf.mxu3  ;;  %v1575_v47 = vadd.f32 %v1574_v37, %v1552_v38  ;;  %v812_v12 = vmul.f32 0.00043402778, %v808_v61  ;;  %v2410_v37 = vrot.slane %v2398_v43, 4 }
 0x189   :  { %v1509_v42 = vadd.f32 %v1508_v54, %v4337_v57  ;;  %v1538_v44 = vadd.f32 %v1537_v21, %v4337_v57  ;;  %v4635_v45 = vpop.f32.mrf.mxu0  ;;  %v4637_v30 = vpop.f32.mrf.mxu1  ;;  %v1396_v54 = vadd.f32 %v4565_v28, %v4358_v9  ;;  %v1425_v21 = vadd.f32 %v4567_v8, %v4358_v9  ;;  %3610 = vmatpush.msk.msra.mxu2 %vm54_vm0, %v2409_v63 }
 0x18a   :  { %v1454_v28 = vadd.f32 %v4635_v45, %v4358_v9  ;;  %3615 = vmatpush.msk.msra.mxu3 %vm54_vm0, %v2410_v37  ;;  %v1483_v27 = vadd.f32 %v4637_v30, %v4358_v9  ;;  %v1399_v30 = vadd.f32 %v4583_v48, %v4381_v33 }
 0x18b   :  { %v1553_v49 = vmax.f32 %v1509_v42, 0.0  ;;  %v1554_v51 = vmax.f32 %v1538_v44, 0.0  ;;  %v4715_v42 = vld [vmem:[%s5342_s1 + $0x20] sm:$0xff]  ;;  %v1556_v46 = vmax.f32 %v1425_v21, 0.0 }
 0x18c   :  { %3562 = vmatmul.msk.f32.gmra.mxu0 %vm45_vm1, %v4390_v26  ;;  %3567 = vmatmul.msk.f32.gmra.mxu1 %vm45_vm1, %v4390_v26  ;;  %v1561_v48 = vmax.f32 %v1399_v30, 0.0 }
 0x18d   :  { %3572 = vmatmul.msk.f32.gmra.mxu2 %vm45_vm1, %v4390_v26  ;;  %3577 = vmatmul.msk.f32.gmra.mxu3 %vm45_vm1, %v4390_v26  ;;  %v1576_v53 = vadd.f32 %v1575_v47, %v1553_v49  ;;  %v799_v16 = vpop.xlane.xlu0 %798 }
 0x18e   :  { %v809_v18 = vadd.f32 %v799_v16, %v555_v17 }
 0x18f   :  { %v1577_v0 = vadd.f32 %v1576_v53, %v1554_v51 }
 0x190   :  { %v4649_v59 = vpop.f32.mrf.mxu2  ;;  %v4651_v19 = vpop.f32.mrf.mxu3  ;;  %v813_v38 = vmul.f32 0.00043402778, %v809_v18  ;;  %v1558_v18 = vmax.f32 %v1483_v27, 0.0 }
 0x191   :  { %1578 = vadd.xlane.f32.xlu0 %v1577_v0  ;;  %v4653_v2 = vpop.f32.mrf.mxu0  ;;  %v4655_v22 = vpop.f32.mrf.mxu1  ;;  %v1512_v61 = vadd.f32 %v4649_v59, %v4358_v9  ;;  %v1428_v59 = vadd.f32 %v4585_v39, %v4381_v33  ;;  %v4771_v39 = vld [vmem:[%s5342_s1 + $0x30] sm:$0xff] }
 0x192   :  { %3188 = vperm.xlu2 %3685, %v811_v55   ;;  %v1557_v55 = vmax.f32 %v1454_v28, 0.0  ;;  %v1457_v34 = vadd.f32 %v4653_v2, %v4381_v33  ;;  %v2653_v2 = vld [vmem:[%s5341_s0 + $0xc0] sm:$0xf0]  ;;  %v1486_v21 = vadd.f32 %v4655_v22, %v4381_v33 }
 0x193   :  { %v1559_v29 = vmax.f32 %v1512_v61, 0.0  ;;  %v2665_v37 = vrot.slane %v2653_v2, 4 }
 0x194   :  { %3563 = vmatmul.msk.f32.gmra.mxu0 %vm45_vm1, %v4411_v62  ;;  %3568 = vmatmul.msk.f32.gmra.mxu1 %vm45_vm1, %v4411_v62  ;;  %v1563_v63 = vmax.f32 %v1457_v34, 0.0 }
 0x195   :  { %3573 = vmatmul.msk.f32.gmra.mxu2 %vm45_vm1, %v4411_v62  ;;  %3578 = vmatmul.msk.f32.gmra.mxu3 %vm45_vm1, %v4411_v62 }
 0x198   :  { %v4670_v11 = vpop.f32.mrf.mxu2  ;;  %v4672_v7 = vpop.f32.mrf.mxu3 }
 0x199   :  { %v4674_v24 = vpop.f32.mrf.mxu0  ;;  %v4676_v56 = vpop.f32.mrf.mxu1 }
 0x19b   :  { %3193 = vperm.xlu1 %3686, %v812_v12   ;;  %v4742_v12 = vld [vmem:[%s5342_s1 + $0x28] sm:$0xff] }
 0x19c   :  { %3564 = vmatmul.msk.f32.gmra.mxu0 %vm45_vm1, %v4438_v32  ;;  %3569 = vmatmul.msk.f32.gmra.mxu1 %vm45_vm1, %v4438_v32 }
 0x19d   :  { %3574 = vmatmul.msk.f32.gmra.mxu2 %vm45_vm1, %v4438_v32  ;;  %3579 = vmatmul.msk.f32.gmra.mxu3 %vm45_vm1, %v4438_v32 }
 0x1a0   :  { %v4691_v31 = vpop.f32.mrf.mxu2  ;;  %v4693_v20 = vpop.f32.mrf.mxu3 }
 0x1a1   :  { %v1656_v23 = vpop.f32.mrf.mxu0  ;;  %v1685_v25 = vpop.f32.mrf.mxu1 }
 0x1a2   :  { %v1657_v35 = vadd.f32 %v1656_v23, %v4009_v41  ;;  %v1686_v36 = vadd.f32 %v1685_v25, %v4009_v41 }
 0x1a4   :  { %3581 = vmatmul.msk.f32.vlgmr.msrb.gmra.mxu0 %vm45_vm1, %v4365_v10  ;;  %3586 = vmatmul.msk.f32.vlgmr.msrb.gmra.mxu1 %vm45_vm1, %v4365_v10  ;;  %v1813_v8 = vmax.f32 %v1657_v35, 0.0  ;;  %v1814_v44 = vmax.f32 %v1686_v36, 0.0  ;;  %v1555_v10 = vmax.f32 %v1396_v54, 0.0  ;;  %v1541_v35 = vadd.f32 %v4651_v19, %v4358_v9 }
 0x1a5   :  { %3591 = vmatmul.msk.f32.vlgmr.msrb.gmra.mxu2 %vm45_vm1, %v4715_v42  ;;  %3596 = vmatmul.msk.f32.vlgmr.msrb.gmra.mxu3 %vm45_vm1, %v4715_v42  ;;  %v1562_v36 = vmax.f32 %v1428_v59, 0.0 }
 0x1a6   :  { %3198 = vperm.xlu0 %3687, %v813_v38   ;;  %v1837_v5 = vadd.f32 %v1814_v44, %v1813_v8  ;;  %v1580_v45 = vadd.f32 %v1556_v46, %v1555_v10  ;;  %v1560_v54 = vmax.f32 %v1541_v35, 0.0  ;;  %v1515_v38 = vadd.f32 %v4670_v11, %v4381_v33  ;;  %3620 = vmatpush.msk.msrb.mxu0 %vm54_vm0, %v2665_v37  ;;  %v2655_v35 = vld [vmem:[%s5341_s0 + $0xd0] sm:$0xf0] }
 0x1a7   :  { %v1402_v44 = vadd.f32 %v4611_v14, %v4404_v52  ;;  %v1431_v10 = vadd.f32 %v4613_v15, %v4404_v52  ;;  %v1460_v11 = vadd.f32 %v4674_v24, %v4404_v52 }
 0x1a8   :  { %v1714_v47 = vpop.f32.mrf.mxu2  ;;  %v1743_v49 = vpop.f32.mrf.mxu3 }
 0x1a9   :  { %v1715_v50 = vadd.f32 %v1714_v47, %v4009_v41  ;;  %v1744_v51 = vadd.f32 %v1743_v49, %v4009_v41  ;;  %v4727_v53 = vpop.f32.mrf.mxu0  ;;  %v4729_v0 = vpop.f32.mrf.mxu1  ;;  %v1567_v14 = vmax.f32 %v1402_v44, 0.0  ;;  %v1568_v15 = vmax.f32 %v1431_v10, 0.0 }
 0x1aa   :  { %v1569_v27 = vmax.f32 %v1460_v11, 0.0 }
 0x1ab   :  { %v1815_v6 = vmax.f32 %v1715_v50, 0.0  ;;  %v1816_v4 = vmax.f32 %v1744_v51, 0.0  ;;  %v1564_v50 = vmax.f32 %v1486_v21, 0.0  ;;  %v1565_v51 = vmax.f32 %v1515_v38, 0.0 }
 0x1ac   :  { %3582 = vmatmul.msk.f32.gmra.mxu0 %vm45_vm1, %v4390_v26  ;;  %3587 = vmatmul.msk.f32.gmra.mxu1 %vm45_vm1, %v4390_v26  ;;  %v1581_v26 = vadd.f32 %v1580_v45, %v1557_v55  ;;  %v1544_v55 = vadd.f32 %v4672_v7, %v4381_v33  ;;  %v1689_v7 = vadd.f32 %v4729_v0, %v4031_v58 }
 0x1ad   :  { %v1838_v3 = vadd.f32 %v1837_v5, %v1815_v6  ;;  %3592 = vmatmul.msk.f32.gmra.mxu2 %vm45_vm1, %v4742_v12  ;;  %3597 = vmatmul.msk.f32.gmra.mxu3 %vm45_vm1, %v4742_v12  ;;  %v4808_v5 = vld [vmem:[%s5342_s1 + $0x38] sm:$0xff]  ;;  %v1660_v6 = vadd.f32 %v4727_v53, %v4031_v58  ;;  %v1594_v30 = vadd.f32 %v1568_v15, %v1567_v14 }
 0x1ae   :  { %v1582_v43 = vadd.f32 %v1581_v26, %v1558_v18  ;;  %v1566_v59 = vmax.f32 %v1544_v55, 0.0  ;;  %v1489_v18 = vadd.f32 %v4676_v56, %v4404_v52  ;;  %v1518_v53 = vadd.f32 %v4691_v31, %v4404_v52 }
 0x1af   :  { %v4748_v16 = vadd.f32 %v1838_v3, %v1816_v4  ;;  %v1819_v34 = vmax.f32 %v1660_v6, 0.0  ;;  %v2667_v56 = vrot.slane %v2655_v35, 4 }
 0x1b0   :  { %v1717_v17 = vpop.f32.mrf.mxu2  ;;  %v4754_v60 = vpop.f32.mrf.mxu3  ;;  %v1583_v19 = vadd.f32 %v1582_v43, %v1559_v29  ;;  %v1820_v43 = vmax.f32 %v1689_v7, 0.0  ;;  %v1571_v37 = vmax.f32 %v1518_v53, 0.0 }
 0x1b1   :  { %v4756_v23 = vpop.f32.mrf.mxu0  ;;  %v4758_v25 = vpop.f32.mrf.mxu1  ;;  %v1718_v61 = vadd.f32 %v1717_v17, %v4031_v58  ;;  %3630 = vmatpush.msk.msrb.mxu2 %vm54_vm0, %v2667_v56 }
 0x1b2   :  { %v1584_v22 = vadd.f32 %v1583_v19, %v1560_v54  ;;  %v298_v17 = vpop.xlane.xlu1 %297  ;;  %v1747_v54 = vadd.f32 %v4754_v60, %v4031_v58  ;;  %v1663_v21 = vadd.f32 %v4756_v23, %v4047_v1  ;;  %v1692_v38 = vadd.f32 %v4758_v25, %v4047_v1 }
 0x1b3   :  { %v1821_v2 = vmax.f32 %v1718_v61, 0.0  ;;  %v1547_v60 = vadd.f32 %v4693_v20, %v4404_v52  ;;  %v556_v20 = vadd.f32 %v4609_v13, %v298_v17 }
 0x1b4   :  { %3583 = vmatmul.msk.f32.gmra.mxu0 %vm45_vm1, %v4411_v62  ;;  %3588 = vmatmul.msk.f32.gmra.mxu1 %vm45_vm1, %v4411_v62  ;;  %v1587_v62 = vadd.f32 %v1562_v36, %v1561_v48  ;;  %v2656_v48 = vld [vmem:[%s5341_s0 + $0xd8] sm:$0xf0]  ;;  %v1595_v36 = vadd.f32 %v1594_v30, %v1569_v27  ;;  %v1825_v15 = vmax.f32 %v1663_v21, 0.0  ;;  %v1826_v55 = vmax.f32 %v1692_v38, 0.0  ;;  %v2657_v21 = vld [vmem:[%s5341_s0 + $0xe0] sm:$0xf0] }
 0x1b5   :  { %3593 = vmatmul.msk.f32.gmra.mxu2 %vm45_vm1, %v4771_v39  ;;  %3598 = vmatmul.msk.f32.gmra.mxu3 %vm45_vm1, %v4771_v39  ;;  %v2668_v19 = vrot.slane %v2656_v48, 4  ;;  %v1572_v6 = vmax.f32 %v1547_v60, 0.0  ;;  %v2669_v60 = vrot.slane %v2657_v21, 4 }
 0x1b6   :  { %v1588_v49 = vadd.f32 %v1587_v62, %v1563_v63  ;;  %v1570_v63 = vmax.f32 %v1489_v18, 0.0  ;;  %v1844_v62 = vadd.f32 %v1820_v43, %v1819_v34 }
 0x1b7   :  { %3635 = vmatpush.msk.msrb.mxu3 %vm54_vm0, %v2668_v19 }
 0x1b8   :  { %v4784_v28 = vpop.f32.mrf.mxu2  ;;  %v4786_v8 = vpop.f32.mrf.mxu3  ;;  %v1589_v24 = vadd.f32 %v1588_v49, %v1564_v50  ;;  %v1596_v44 = vadd.f32 %v1595_v36, %v1570_v63  ;;  %v1845_v10 = vadd.f32 %v1844_v62, %v1821_v2  ;;  %v1822_v50 = vmax.f32 %v1747_v54, 0.0 }
 0x1b9   :  { %v4793_v46 = vpop.f32.mrf.mxu0  ;;  %v4795_v47 = vpop.f32.mrf.mxu1  ;;  %v1750_v13 = vadd.f32 %v4786_v8, %v4047_v1 }
 0x1ba   :  { %v1590_v26 = vadd.f32 %v1589_v24, %v1565_v51  ;;  %v1597_v14 = vadd.f32 %v1596_v44, %v1571_v37  ;;  %v806_v25 = vpop.xlane.xlu1 %805  ;;  %v1846_v7 = vadd.f32 %v1845_v10, %v1822_v50  ;;  %v2658_v10 = vld [vmem:[%s5341_s0 + $0xe8] sm:$0xf0]  ;;  %v4903_v50 = vpop.xlane.xlu2 %1070 }
 0x1bb   :  { %1585 = vadd.xlane.f32.xlu2 %v1584_v22  ;;  %v1721_v22 = vadd.f32 %v4784_v28, %v4047_v1  ;;  %v810_v28 = vadd.f32 %v806_v25, %v556_v20  ;;  %v1828_v36 = vmax.f32 %v1750_v13, 0.0  ;;  %v2914_v20 = vld [vmem:[%s5341_s0 + $0xf8] sm:$0xf0] }
 0x1bc   :  { %3584 = vmatmul.msk.f32.gmra.mxu0 %vm45_vm1, %v4438_v32  ;;  %3589 = vmatmul.msk.f32.gmra.mxu1 %vm45_vm1, %v4438_v32  ;;  %v2654_v32 = vld [vmem:[%s5341_s0 + $0xc8] sm:$0xf0]  ;;  %v1591_v31 = vadd.f32 %v1590_v26, %v1566_v59  ;;  %v1598_v61 = vadd.f32 %v1597_v14, %v1572_v6  ;;  %v1851_v26 = vadd.f32 %v1826_v55, %v1825_v15 }
 0x1bd   :  { %3594 = vmatmul.msk.f32.gmra.mxu2 %vm45_vm1, %v4808_v5  ;;  %3599 = vmatmul.msk.f32.gmra.mxu3 %vm45_vm1, %v4808_v5  ;;  %v2666_v45 = vrot.slane %v2654_v32, 4  ;;  %v814_v43 = vmul.f32 0.00043402778, %v810_v28 }
 0x1bf   :  { %3625 = vmatpush.msk.msrb.mxu1 %vm54_vm0, %v2666_v45  ;;  %v1827_v45 = vmax.f32 %v1721_v22, 0.0  ;;  %v2670_v22 = vrot.slane %v2658_v10, 4 }
 0x1c0   :  { %v4822_v3 = vpop.f32.mrf.mxu2  ;;  %v4824_v4 = vpop.f32.mrf.mxu3 }
 0x1c1   :  { %v4831_v0 = vpop.f32.mrf.mxu0  ;;  %v4833_v29 = vpop.f32.mrf.mxu1  ;;  %v1852_v18 = vadd.f32 %v1851_v26, %v1827_v45 }
 0x1c2   :  { %v4928_v28 = vpop.xlane.xlu1 %1077 }
 0x1c3   :  { %v1853_v2 = vadd.f32 %v1852_v18, %v1828_v36 }
 0x1c4   :  { %3601 = vmatmul.msk.f32.vlgmr.msra.gmra.mxu0 %vm45_vm1, %v4715_v42  ;;  %3606 = vmatmul.msk.f32.vlgmr.msra.gmra.mxu1 %vm45_vm1, %v4715_v42 }
 0x1c5   :  { %3611 = vmatmul.msk.f32.vlgmr.msra.gmra.mxu2 %vm45_vm1, %v4715_v42  ;;  %3616 = vmatmul.msk.f32.vlgmr.msra.gmra.mxu3 %vm45_vm1, %v4715_v42 }
 0x1c6   :  { %1592 = vadd.xlane.f32.xlu1 %v1591_v31  ;;  %3640 = vmatpush.msk.msra.mxu0 %vm54_vm0, %v2669_v60 }
 0x1c7   :  { %3645 = vmatpush.msk.msra.mxu1 %vm54_vm0, %v2670_v22 }
 0x1c8   :  { %v1916_v49 = vpop.f32.mrf.mxu2  ;;  %v1945_v11 = vpop.f32.mrf.mxu3 }
 0x1c9   :  { %v1775_v23 = vpop.f32.mrf.mxu0  ;;  %v1804_v51 = vpop.f32.mrf.mxu1 }
 0x1ca   :  { %v1776_v32 = vadd.f32 %v1775_v23, %v4031_v58  ;;  %v1805_v24 = vadd.f32 %v1804_v51, %v4031_v58  ;;  %v1917_v23 = vadd.f32 %v1916_v49, %v4009_v41  ;;  %v1946_v51 = vadd.f32 %v1945_v11, %v4009_v41  ;;  %v2913_v11 = vld [vmem:[%s5341_s0 + $0xf0] sm:$0xf0] }
 0x1cb   :  { %v2925_v6 = vrot.slane %v2913_v11, 4 }
 0x1cc   :  { %v1823_v27 = vmax.f32 %v1776_v32, 0.0  ;;  %3602 = vmatmul.msk.f32.gmra.mxu0 %vm45_vm1, %v4742_v12  ;;  %3607 = vmatmul.msk.f32.gmra.mxu1 %vm45_vm1, %v4742_v12  ;;  %v1824_v30 = vmax.f32 %v1805_v24, 0.0  ;;  %v2073_v15 = vmax.f32 %v1917_v23, 0.0  ;;  %v2074_v55 = vmax.f32 %v1946_v51, 0.0 }
 0x1cd   :  { %3612 = vmatmul.msk.f32.gmra.mxu2 %vm45_vm1, %v4742_v12  ;;  %3617 = vmatmul.msk.f32.gmra.mxu3 %vm45_vm1, %v4742_v12 }
 0x1ce   :  { %v1847_v59 = vadd.f32 %v1846_v7, %v1823_v27  ;;  %v2926_v7 = vrot.slane %v2914_v20, 4  ;;  %v2097_v26 = vadd.f32 %v2074_v55, %v2073_v15  ;;  %3650 = vmatpush.msk.msra.mxu2 %vm54_vm0, %v2925_v6  ;;  %v1724_v15 = vadd.f32 %v4822_v3, %v4081_v40 }
 0x1cf   :  { %v1773_v55 = vadd.f32 %v4831_v0, %v4009_v41  ;;  %v1753_v0 = vadd.f32 %v4824_v4, %v4081_v40 }
 0x1d0   :  { %1599 = vadd.xlane.f32.xlu0 %v1598_v61  ;;  %v1919_v53 = vpop.f32.mrf.mxu2  ;;  %v1948_v17 = vpop.f32.mrf.mxu3  ;;  %v1848_v34 = vadd.f32 %v1847_v59, %v1824_v30  ;;  %3655 = vmatpush.msk.msra.mxu3 %vm54_vm0, %v2926_v7 }
 0x1d1   :  { %v1778_v35 = vpop.f32.mrf.mxu0  ;;  %v1807_v48 = vpop.f32.mrf.mxu1  ;;  %v1920_v45 = vadd.f32 %v1919_v53, %v4031_v58  ;;  %v1949_v13 = vadd.f32 %v1948_v17, %v4031_v58 }
 0x1d2   :  { %v1779_v56 = vadd.f32 %v1778_v35, %v4047_v1  ;;  %v1808_v19 = vadd.f32 %v1807_v48, %v4047_v1  ;;  %1849 = vadd.xlane.f32.xlu1 %v1848_v34  ;;  %v4930_v61 = vpop.xlane.xlu2 %1091 }
 0x1d3   :  { %3203 = vperm.xlu2 %3685, %v814_v43   ;;  %v2079_v18 = vmax.f32 %v1920_v45, 0.0  ;;  %v2080_v43 = vmax.f32 %v1949_v13, 0.0 }
 0x1d4   :  { %v1829_v31 = vmax.f32 %v1779_v56, 0.0  ;;  %3603 = vmatmul.msk.f32.gmra.mxu0 %vm45_vm1, %v4771_v39  ;;  %3608 = vmatmul.msk.f32.gmra.mxu1 %vm45_vm1, %v4771_v39  ;;  %v1830_v8 = vmax.f32 %v1808_v19, 0.0 }
 0x1d5   :  { %3613 = vmatmul.msk.f32.gmra.mxu2 %vm45_vm1, %v4771_v39  ;;  %3618 = vmatmul.msk.f32.gmra.mxu3 %vm45_vm1, %v4771_v39  ;;  %v2104_v60 = vadd.f32 %v2080_v43, %v2079_v18 }
 0x1d6   :  { %v1854_v63 = vadd.f32 %v1853_v2, %v1829_v31 }
 0x1d8   :  { %v4884_v37 = vpop.f32.mrf.mxu2  ;;  %v4886_v54 = vpop.f32.mrf.mxu3  ;;  %v1855_v62 = vadd.f32 %v1854_v63, %v1830_v8  ;;  %v1666_v63 = vadd.f32 %v4793_v46, %v4081_v40 }
 0x1d9   :  { %v4891_v38 = vpop.f32.mrf.mxu0  ;;  %v4893_v44 = vpop.f32.mrf.mxu1 }
 0x1da   :  { %1856 = vadd.xlane.f32.xlu0 %v1855_v62  ;;  %v1085_v8 = vpop.xlane.xlu0 %1084  ;;  %v1695_v62 = vadd.f32 %v4795_v47, %v4081_v40 }
 0x1dc   :  { %3604 = vmatmul.msk.f32.gmra.mxu0 %vm45_vm1, %v4808_v5  ;;  %3609 = vmatmul.msk.f32.gmra.mxu1 %vm45_vm1, %v4808_v5  ;;  %v1832_v11 = vmax.f32 %v1695_v62, 0.0 }
 0x1dd   :  { %3614 = vmatmul.msk.f32.gmra.mxu2 %vm45_vm1, %v4808_v5  ;;  %3619 = vmatmul.msk.f32.gmra.mxu3 %vm45_vm1, %v4808_v5  ;;  %v4951_v10 = vpop.xlane.xlu1 %1324 }
 0x1e0   :  { %v4912_v14 = vpop.f32.mrf.mxu2  ;;  %v4914_v25 = vpop.f32.mrf.mxu3 }
 0x1e1   :  { %v1974_v32 = vpop.f32.mrf.mxu0  ;;  %v2003_v24 = vpop.f32.mrf.mxu1  ;;  %v1926_v43 = vadd.f32 %v4912_v14, %v4081_v40 }
 0x1e2   :  { %v1975_v49 = vadd.f32 %v1974_v32, %v4009_v41  ;;  %v2004_v30 = vadd.f32 %v2003_v24, %v4009_v41 }
 0x1e4   :  { %v2075_v27 = vmax.f32 %v1975_v49, 0.0  ;;  %3621 = vmatmul.msk.f32.vlgmr.msrb.gmra.mxu0 %vm45_vm1, %v4715_v42  ;;  %3626 = vmatmul.msk.f32.vlgmr.msrb.gmra.mxu1 %vm45_vm1, %v4715_v42  ;;  %v2076_v35 = vmax.f32 %v2004_v30, 0.0  ;;  %v1831_v49 = vmax.f32 %v1666_v63, 0.0  ;;  %v1833_v30 = vmax.f32 %v1724_v15, 0.0 }
 0x1e5   :  { %3631 = vmatmul.msk.f32.vlgmr.msrb.gmra.mxu2 %vm45_vm1, %v4715_v42  ;;  %3636 = vmatmul.msk.f32.vlgmr.msrb.gmra.mxu3 %vm45_vm1, %v4715_v42  ;;  %v1834_v63 = vmax.f32 %v1753_v0, 0.0 }
 0x1e6   :  { %v2098_v59 = vadd.f32 %v2097_v26, %v2075_v27 }
 0x1e8   :  { %v2032_v53 = vpop.f32.mrf.mxu2  ;;  %v2061_v34 = vpop.f32.mrf.mxu3  ;;  %v2099_v2 = vadd.f32 %v2098_v59, %v2076_v35  ;;  %v1817_v59 = vmax.f32 %v1773_v55, 0.0  ;;  %v1955_v35 = vadd.f32 %v4914_v25, %v4081_v40  ;;  %v1923_v25 = vadd.f32 %v4884_v37, %v4047_v1 }
 0x1e9   :  { %v2033_v17 = vadd.f32 %v2032_v53, %v4009_v41  ;;  %v2062_v48 = vadd.f32 %v2061_v34, %v4009_v41  ;;  %v1977_v36 = vpop.f32.mrf.mxu0  ;;  %v2006_v56 = vpop.f32.mrf.mxu1  ;;  %v1858_v53 = vadd.f32 %v1832_v11, %v1831_v49  ;;  %v1802_v34 = vadd.f32 %v4833_v29, %v4009_v41 }
 0x1ea   :  { %v1978_v19 = vadd.f32 %v1977_v36, %v4031_v58  ;;  %v2007_v23 = vadd.f32 %v2006_v56, %v4031_v58  ;;  %v2085_v37 = vmax.f32 %v1923_v25, 0.0 }
 0x1eb   :  { %v2077_v31 = vmax.f32 %v2033_v17, 0.0  ;;  %v2078_v22 = vmax.f32 %v2062_v48, 0.0  ;;  %v1782_v48 = vadd.f32 %v4891_v38, %v4081_v40  ;;  %v1859_v56 = vadd.f32 %v1858_v53, %v1833_v30 }
 0x1ec   :  { %v2081_v21 = vmax.f32 %v1978_v19, 0.0  ;;  %3622 = vmatmul.msk.f32.gmra.mxu0 %vm45_vm1, %v4742_v12  ;;  %3627 = vmatmul.msk.f32.gmra.mxu1 %vm45_vm1, %v4742_v12  ;;  %v2082_v7 = vmax.f32 %v2007_v23, 0.0  ;;  %v1840_v19 = vadd.f32 %v4748_v16, %v1817_v59  ;;  %v1818_v62 = vmax.f32 %v1802_v34, 0.0 }
 0x1ed   :  { %3632 = vmatmul.msk.f32.gmra.mxu2 %vm45_vm1, %v4742_v12  ;;  %3637 = vmatmul.msk.f32.gmra.mxu3 %vm45_vm1, %v4742_v12  ;;  %v1339_v46 = vpop.xlane.xlu2 %1338  ;;  %v2100_v47 = vadd.f32 %v2099_v2, %v2077_v31  ;;  %v1952_v2 = vadd.f32 %v4886_v54, %v4047_v1  ;;  %v1811_v54 = vadd.f32 %v4893_v44, %v4081_v40 }
 0x1ee   :  { %v4958_v51 = vadd.f32 %v1339_v46, %v1085_v8  ;;  %v2105_v32 = vadd.f32 %v2104_v60, %v2081_v21  ;;  %v2091_v21 = vmax.f32 %v1926_v43, 0.0  ;;  %v2092_v60 = vmax.f32 %v1955_v35, 0.0  ;;  %v2915_v35 = vld [vmem:[%s5341_s0 + $0x100] sm:$0xf0] }
 0x1ef   :  { %v2101_v24 = vadd.f32 %v2100_v47, %v2078_v22  ;;  %v1835_v22 = vmax.f32 %v1782_v48, 0.0  ;;  %v1860_v46 = vadd.f32 %v1859_v56, %v1834_v63  ;;  %v1841_v47 = vadd.f32 %v1840_v19, %v1818_v62 }
 0x1f0   :  { %v2035_v20 = vpop.f32.mrf.mxu2  ;;  %v2064_v6 = vpop.f32.mrf.mxu3  ;;  %v2106_v3 = vadd.f32 %v2105_v32, %v2082_v7  ;;  %v2086_v15 = vmax.f32 %v1952_v2, 0.0  ;;  %v2118_v32 = vadd.f32 %v2092_v60, %v2091_v21  ;;  %v1836_v7 = vmax.f32 %v1811_v54, 0.0  ;;  %v5052_v54 = vld [vmem:[%s5342_s1 + $0x48] sm:$0xff] }
 0x1f1   :  { %v2036_v45 = vadd.f32 %v2035_v20, %v4031_v58  ;;  %v2065_v27 = vadd.f32 %v2064_v6, %v4031_v58  ;;  %2102 = vadd.xlane.f32.xlu1 %v2101_v24  ;;  %v1980_v26 = vpop.f32.mrf.mxu0  ;;  %v2009_v13 = vpop.f32.mrf.mxu1  ;;  %v1861_v44 = vadd.f32 %v1860_v46, %v1835_v22  ;;  %v2927_v48 = vrot.slane %v2915_v35, 4 }
 0x1f2   :  { %v1981_v23 = vadd.f32 %v1980_v26, %v4047_v1  ;;  %v5000_v24 = vpop.xlane.xlu0 %1331  ;;  %v2111_v6 = vadd.f32 %v2086_v15, %v2085_v37  ;;  %v1347_v60 = vadd.f32 %v4951_v10, %v4903_v50 }
 0x1f3   :  { %v2083_v18 = vmax.f32 %v2036_v45, 0.0  ;;  %v2084_v17 = vmax.f32 %v2065_v27, 0.0  ;;  %v2010_v45 = vadd.f32 %v2009_v13, %v4047_v1  ;;  %v1862_v43 = vadd.f32 %v1861_v44, %v1836_v7  ;;  %v2916_v13 = vld [vmem:[%s5341_s0 + $0x108] sm:$0xf0]  ;;  %3660 = vmatpush.msk.msrb.mxu0 %vm54_vm0, %v2927_v48 }
 0x1f4   :  { %3623 = vmatmul.msk.f32.gmra.mxu0 %vm45_vm1, %v4771_v39  ;;  %3628 = vmatmul.msk.f32.gmra.mxu1 %vm45_vm1, %v4771_v39  ;;  %v2087_v11 = vmax.f32 %v1981_v23, 0.0  ;;  %v2928_v56 = vrot.slane %v2916_v13, 4 }
 0x1f5   :  { %3633 = vmatmul.msk.f32.gmra.mxu2 %vm45_vm1, %v4771_v39  ;;  %3638 = vmatmul.msk.f32.gmra.mxu3 %vm45_vm1, %v4771_v39  ;;  %v1346_v4 = vpop.xlane.xlu1 %1345  ;;  %v2107_v29 = vadd.f32 %v2106_v3, %v2083_v18  ;;  %v2088_v19 = vmax.f32 %v2010_v45, 0.0  ;;  %v3189_v15 = vpop.permute.xlu2 %3188 }
 0x1f6   :  { %v4985_v36 = vadd.f32 %v1346_v4, %v4930_v61  ;;  %v2112_v34 = vadd.f32 %v2111_v6, %v2087_v11  ;;  %3665 = vmatpush.msk.msrb.mxu1 %vm54_vm0, %v2928_v56 }
 0x1f7   :  { %v2108_v14 = vadd.f32 %v2107_v29, %v2084_v17  ;;  %v2917_v17 = vld [vmem:[%s5341_s0 + $0x110] sm:$0xf0] }
 0x1f8   :  { %v2038_v31 = vpop.f32.mrf.mxu2  ;;  %v2067_v8 = vpop.f32.mrf.mxu3  ;;  %v2929_v2 = vrot.slane %v2917_v17, 4 }
 0x1f9   :  { %2109 = vadd.xlane.f32.xlu0 %v2108_v14  ;;  %v1983_v38 = vpop.f32.mrf.mxu0  ;;  %v2012_v61 = vpop.f32.mrf.mxu1  ;;  %v2039_v27 = vadd.f32 %v2038_v31, %v4047_v1  ;;  %v2918_v14 = vld [vmem:[%s5341_s0 + $0x118] sm:$0xf0] }
 0x1fa   :  { %v1984_v16 = vadd.f32 %v1983_v38, %v4081_v40  ;;  %v2013_v49 = vadd.f32 %v2012_v61, %v4081_v40  ;;  %v2930_v31 = vrot.slane %v2918_v14, 4  ;;  %v2113_v38 = vadd.f32 %v2112_v34, %v2088_v19  ;;  %3670 = vmatpush.msk.msrb.mxu2 %vm54_vm0, %v2929_v2 }
 0x1fb   :  { %v2089_v25 = vmax.f32 %v2039_v27, 0.0  ;;  %v2068_v61 = vadd.f32 %v2067_v8, %v4047_v1  ;;  %v5047_v8 = vld [vmem:[%s5342_s1 + $0x40] sm:$0xff] }
 0x1fc   :  { %v2093_v55 = vmax.f32 %v1984_v16, 0.0  ;;  %3624 = vmatmul.msk.f32.gmra.mxu0 %vm45_vm1, %v4808_v5  ;;  %3629 = vmatmul.msk.f32.gmra.mxu1 %vm45_vm1, %v4808_v5  ;;  %v2094_v59 = vmax.f32 %v2013_v49, 0.0  ;;  %v3226_v11 = vmul.f32 %v3189_v15, %v5047_v8 }
 0x1fd   :  { %3634 = vmatmul.msk.f32.gmra.mxu2 %vm45_vm1, %v4808_v5  ;;  %3639 = vmatmul.msk.f32.gmra.mxu3 %vm45_vm1, %v4808_v5  ;;  %v2090_v37 = vmax.f32 %v2068_v61, 0.0 }
 0x1fe   :  { %1842 = vadd.xlane.f32.xlu2 %v1841_v47  ;;  %v2119_v20 = vadd.f32 %v2118_v32, %v2093_v55  ;;  %v2114_v47 = vadd.f32 %v2113_v38, %v2089_v25  ;;  %3675 = vmatpush.msk.msrb.mxu3 %vm54_vm0, %v2930_v31 }
 0x200   :  { %v2041_v26 = vpop.f32.mrf.mxu2  ;;  %v2070_v30 = vpop.f32.mrf.mxu3  ;;  %v2120_v4 = vadd.f32 %v2119_v20, %v2094_v59  ;;  %v2115_v32 = vadd.f32 %v2114_v47, %v2090_v37 }
 0x201   :  { %v2042_v3 = vadd.f32 %v2041_v26, %v4081_v40  ;;  %v2071_v18 = vadd.f32 %v2070_v30, %v4081_v40  ;;  %v5011_v53 = vpop.f32.mrf.mxu0  ;;  %v5013_v0 = vpop.f32.mrf.mxu1  ;;  %v5079_v26 = vld [vmem:[%s5342_s1 + $0x50] sm:$0xff] }
 0x202   :  { %v2177_v48 = vadd.f32 %v5011_v53, %v4009_v41  ;;  %v2206_v56 = vadd.f32 %v5013_v0, %v4009_v41 }
 0x203   :  { %v2095_v29 = vmax.f32 %v2042_v3, 0.0  ;;  %v2096_v63 = vmax.f32 %v2071_v18, 0.0 }
 0x204   :  { %3641 = vmatmul.msk.f32.vlgmr.msra.gmra.mxu0 %vm45_vm1, %v4715_v42  ;;  %3646 = vmatmul.msk.f32.vlgmr.msra.gmra.mxu1 %vm45_vm1, %v4715_v42  ;;  %v1579_v62 = vpop.xlane.xlu0 %1578  ;;  %v2334_v53 = vmax.f32 %v2206_v56, 0.0 }
 0x205   :  { %3651 = vmatmul.msk.f32.vlgmr.msra.gmra.mxu2 %vm45_vm1, %v4715_v42  ;;  %3656 = vmatmul.msk.f32.vlgmr.msra.gmra.mxu3 %vm45_vm1, %v4715_v42  ;;  %v2121_v21 = vadd.f32 %v2120_v4, %v2095_v29  ;;  %v1601_v23 = vadd.f32 %v1579_v62, %v1347_v60 }
 0x206   :  { %1863 = vadd.xlane.f32.xlu2 %v1862_v43 }
 0x207   :  { %v2122_v22 = vadd.f32 %v2121_v21, %v2096_v63  ;;  %v1605_v55 = vmul.f32 0.00043402778, %v1601_v23  ;;  %v2333_v21 = vmax.f32 %v2177_v48, 0.0 }
 0x208   :  { %v2234_v16 = vpop.f32.mrf.mxu2  ;;  %v5041_v46 = vpop.f32.mrf.mxu3 }
 0x209   :  { %2123 = vadd.xlane.f32.xlu1 %v2122_v22  ;;  %v2179_v50 = vpop.f32.mrf.mxu0  ;;  %v2208_v10 = vpop.f32.mrf.mxu1  ;;  %v2235_v63 = vadd.f32 %v2234_v16, %v4009_v41  ;;  %v2357_v23 = vadd.f32 %v2334_v53, %v2333_v21 }
 0x20a   :  { %v2180_v13 = vadd.f32 %v2179_v50, %v4031_v58  ;;  %v2209_v17 = vadd.f32 %v2208_v10, %v4031_v58  ;;  %v2264_v50 = vadd.f32 %v5041_v46, %v4009_v41  ;;  %v1348_v46 = vadd.f32 %v5000_v24, %v4928_v28 }
 0x20b   :  { %v2335_v38 = vmax.f32 %v2235_v63, 0.0 }
 0x20c   :  { %3642 = vmatmul.msk.f32.gmra.mxu0 %vm45_vm1, %v4742_v12  ;;  %3647 = vmatmul.msk.f32.gmra.mxu1 %vm45_vm1, %v4742_v12  ;;  %v2339_v25 = vmax.f32 %v2180_v13, 0.0  ;;  %v2340_v2 = vmax.f32 %v2209_v17, 0.0 }
 0x20d   :  { %3652 = vmatmul.msk.f32.gmra.mxu2 %vm45_vm1, %v4742_v12  ;;  %3657 = vmatmul.msk.f32.gmra.mxu3 %vm45_vm1, %v4742_v12  ;;  %v3194_v49 = vpop.permute.xlu1 %3193 }
 0x20e   :  { %2116 = vadd.xlane.f32.xlu2 %v2115_v32  ;;  %3208 = vperm.xlu0 %3687, %v1605_v55   ;;  %v3227_v44 = vmul.f32 %v3194_v49, %v5052_v54  ;;  %v2364_v0 = vadd.f32 %v2340_v2, %v2339_v25  ;;  %v2358_v32 = vadd.f32 %v2357_v23, %v2335_v38 }
 0x210   :  { %v3234_v20 = vadd.f32 %v3227_v44, %v3226_v11  ;;  %v2237_v6 = vpop.f32.mrf.mxu2  ;;  %v2266_v7 = vpop.f32.mrf.mxu3  ;;  %v2336_v44 = vmax.f32 %v2264_v50, 0.0 }
 0x211   :  { %v5064_v45 = vpop.f32.mrf.mxu0  ;;  %v5066_v27 = vpop.f32.mrf.mxu1  ;;  %v2238_v4 = vadd.f32 %v2237_v6, %v4031_v58  ;;  %v2267_v60 = vadd.f32 %v2266_v7, %v4031_v58 }
 0x212   :  { %v2359_v17 = vadd.f32 %v2358_v32, %v2336_v44 }
 0x213   :  { %v2341_v62 = vmax.f32 %v2238_v4, 0.0  ;;  %v2342_v10 = vmax.f32 %v2267_v60, 0.0 }
 0x214   :  { %3643 = vmatmul.msk.f32.gmra.mxu0 %vm45_vm1, %v4771_v39  ;;  %3648 = vmatmul.msk.f32.gmra.mxu1 %vm45_vm1, %v4771_v39 }
 0x215   :  { %3653 = vmatmul.msk.f32.gmra.mxu2 %vm45_vm1, %v4771_v39  ;;  %3658 = vmatmul.msk.f32.gmra.mxu3 %vm45_vm1, %v4771_v39  ;;  %v2365_v61 = vadd.f32 %v2364_v0, %v2341_v62 }
 0x217   :  { %v2366_v49 = vadd.f32 %v2365_v61, %v2342_v10 }
 0x218   :  { %v3199_v30 = vpop.permute.xlu0 %3198  ;;  %v5081_v59 = vpop.f32.mrf.mxu2 }
 0x219   :  { %v3228_v3 = vmul.f32 %v3199_v30, %v5079_v26  ;;  %v5084_v18 = vpop.f32.mrf.mxu3  ;;  %v2185_v34 = vpop.f32.mrf.mxu0 }
 0x21a   :  { %v2214_v43 = vpop.f32.mrf.mxu1  ;;  %v2186_v30 = vadd.f32 %v2185_v34, %v4081_v40 }
 0x21b   :  { %v5086_v35 = vadd.f32 %v3234_v20, %v3228_v3  ;;  %v2215_v3 = vadd.f32 %v2214_v43, %v4081_v40 }
 0x21c   :  { %3644 = vmatmul.msk.f32.gmra.mxu0 %vm45_vm1, %v4808_v5  ;;  %3649 = vmatmul.msk.f32.gmra.mxu1 %vm45_vm1, %v4808_v5  ;;  %v2351_v34 = vmax.f32 %v2186_v30, 0.0  ;;  %v2212_v30 = vadd.f32 %v5066_v27, %v4047_v1 }
 0x21d   :  { %3654 = vmatmul.msk.f32.gmra.mxu2 %vm45_vm1, %v4808_v5  ;;  %3659 = vmatmul.msk.f32.gmra.mxu3 %vm45_vm1, %v4808_v5  ;;  %v2352_v43 = vmax.f32 %v2215_v3, 0.0 }
 0x21f   :  { %v2378_v21 = vadd.f32 %v2352_v43, %v2351_v34 }
 0x220   :  { %v2243_v29 = vpop.f32.mrf.mxu2 }
 0x221   :  { %v5103_v14 = vpop.f32.mrf.mxu3  ;;  %v2292_v19 = vpop.f32.mrf.mxu0  ;;  %v2244_v48 = vadd.f32 %v2243_v29, %v4081_v40 }
 0x222   :  { %v2321_v31 = vpop.f32.mrf.mxu1  ;;  %v2293_v37 = vadd.f32 %v2292_v19, %v4009_v41  ;;  %v2273_v53 = vadd.f32 %v5103_v14, %v4081_v40 }
 0x223   :  { %v2322_v4 = vadd.f32 %v2321_v31, %v4009_v41  ;;  %v5153_v41 = vld [vmem:[%s5342_s1 + $0x58] sm:$0xff]  ;;  %v2353_v29 = vmax.f32 %v2244_v48, 0.0 }
 0x224   :  { %3661 = vmatmul.msk.f32.vlgmr.msrb.gmra.mxu0 %vm45_vm1, %v4715_v42  ;;  %3666 = vmatmul.msk.f32.vlgmr.msrb.gmra.mxu1 %vm45_vm1, %v4715_v42 }
 0x225   :  { %3671 = vmatmul.msk.f32.vlgmr.msrb.gmra.mxu2 %vm45_vm1, %v4715_v42  ;;  %3676 = vmatmul.msk.f32.vlgmr.msrb.gmra.mxu3 %vm45_vm1, %v4715_v42  ;;  %v2338_v63 = vmax.f32 %v2322_v4, 0.0  ;;  %v2379_v38 = vadd.f32 %v2378_v21, %v2353_v29  ;;  %v2241_v4 = vadd.f32 %v5081_v59, %v4047_v1 }
 0x227   :  { %v2347_v29 = vmax.f32 %v2241_v4, 0.0 }
 0x228   :  { %v5115_v22 = vpop.f32.mrf.mxu2 }
 0x229   :  { %v5117_v16 = vpop.f32.mrf.mxu3  ;;  %v2295_v47 = vpop.f32.mrf.mxu0 }
 0x22a   :  { %v2296_v15 = vadd.f32 %v2295_v47, %v4031_v58  ;;  %v2324_v42 = vpop.f32.mrf.mxu1 }
 0x22b   :  { %v2325_v55 = vadd.f32 %v2324_v42, %v4031_v58  ;;  %v2337_v58 = vmax.f32 %v2293_v37, 0.0  ;;  %v2354_v37 = vmax.f32 %v2273_v53, 0.0  ;;  %v2441_v42 = vadd.f32 %v5115_v22, %v4337_v57 }
 0x22c   :  { %v2343_v11 = vmax.f32 %v2296_v15, 0.0  ;;  %3662 = vmatmul.msk.f32.gmra.mxu0 %vm45_vm1, %v4742_v12  ;;  %3667 = vmatmul.msk.f32.gmra.mxu1 %vm45_vm1, %v4742_v12  ;;  %v2270_v53 = vadd.f32 %v5084_v18, %v4047_v1 }
 0x22d   :  { %3672 = vmatmul.msk.f32.gmra.mxu2 %vm45_vm1, %v4742_v12  ;;  %3677 = vmatmul.msk.f32.gmra.mxu3 %vm45_vm1, %v4742_v12  ;;  %v2344_v6 = vmax.f32 %v2325_v55, 0.0  ;;  %v2360_v25 = vadd.f32 %v2359_v17, %v2337_v58 }
 0x22e   :  { %v2367_v20 = vadd.f32 %v2366_v49, %v2343_v11  ;;  %v1586_v7 = vpop.xlane.xlu2 %1585  ;;  %v2597_v11 = vmax.f32 %v2441_v42, 0.0  ;;  %v2348_v42 = vmax.f32 %v2270_v53, 0.0 }
 0x22f   :  { %v1602_v13 = vadd.f32 %v1586_v7, %v1348_v46  ;;  %v2361_v31 = vadd.f32 %v2360_v25, %v2338_v63 }
 0x230   :  { %v5137_v28 = vpop.f32.mrf.mxu2  ;;  %v2368_v24 = vadd.f32 %v2367_v20, %v2344_v6 }
 0x231   :  { %v1606_v56 = vmul.f32 0.00043402778, %v1602_v13  ;;  %v5140_v12 = vpop.f32.mrf.mxu3  ;;  %v5142_v19 = vpop.f32.mrf.mxu0 }
 0x232   :  { %v5144_v2 = vpop.f32.mrf.mxu1  ;;  %2369 = vadd.xlane.f32.xlu2 %v2368_v24 }
 0x233   :  { %3213 = vperm.xlu1 %3686, %v1606_v56   ;;  %v2346_v56 = vmax.f32 %v2212_v30, 0.0 }
 0x234   :  { %3663 = vmatmul.msk.f32.gmra.mxu0 %vm45_vm1, %v4771_v39  ;;  %3668 = vmatmul.msk.f32.gmra.mxu1 %vm45_vm1, %v4771_v39 }
 0x235   :  { %3673 = vmatmul.msk.f32.gmra.mxu2 %vm45_vm1, %v4771_v39  ;;  %3678 = vmatmul.msk.f32.gmra.mxu3 %vm45_vm1, %v4771_v39 }
 0x236   :  { %v3204_v62 = vpop.permute.xlu2 %3203 }
 0x237   :  { %v3229_v0 = vmul.f32 %v3204_v62, %v5153_v41 }
 0x238   :  { %2362 = vadd.xlane.f32.xlu0 %v2361_v31  ;;  %v2446_v60 = vpop.f32.mrf.mxu2 }
 0x239   :  { %v5163_v61 = vadd.f32 %v5086_v35, %v3229_v0  ;;  %v2475_v23 = vpop.f32.mrf.mxu3  ;;  %v1593_v47 = vpop.xlane.xlu1 %1592  ;;  %v2380_v35 = vadd.f32 %v2379_v38, %v2354_v37  ;;  %v2447_v59 = vadd.f32 %v2446_v60, %v4381_v33  ;;  %v2299_v37 = vadd.f32 %v5142_v19, %v4047_v1 }
 0x23a   :  { %v5166_v50 = vadd.f32 %v1593_v47, %v4958_v51  ;;  %v2301_v39 = vpop.f32.mrf.mxu0  ;;  %v2330_v10 = vpop.f32.mrf.mxu1  ;;  %v2470_v51 = vadd.f32 %v5117_v16, %v4337_v57  ;;  %v2183_v16 = vadd.f32 %v5064_v45, %v4047_v1  ;;  %v2476_v0 = vadd.f32 %v2475_v23, %v4381_v33 }
 0x23b   :  { %v2302_v15 = vadd.f32 %v2301_v39, %v4081_v40  ;;  %v2331_v14 = vadd.f32 %v2330_v10, %v4081_v40  ;;  %v2444_v39 = vadd.f32 %v5137_v28, %v4358_v9  ;;  %v2473_v10 = vadd.f32 %v5140_v12, %v4358_v9 }
 0x23c   :  { %3664 = vmatmul.msk.f32.gmra.mxu0 %vm45_vm1, %v4808_v5  ;;  %3669 = vmatmul.msk.f32.gmra.mxu1 %vm45_vm1, %v4808_v5  ;;  %v2598_v46 = vmax.f32 %v2470_v51, 0.0  ;;  %v2345_v48 = vmax.f32 %v2183_v16, 0.0  ;;  %v2609_v60 = vmax.f32 %v2447_v59, 0.0  ;;  %v2610_v51 = vmax.f32 %v2476_v0, 0.0 }
 0x23d   :  { %v2355_v55 = vmax.f32 %v2302_v15, 0.0  ;;  %3674 = vmatmul.msk.f32.gmra.mxu2 %vm45_vm1, %v4808_v5  ;;  %3679 = vmatmul.msk.f32.gmra.mxu3 %vm45_vm1, %v4808_v5  ;;  %v2356_v32 = vmax.f32 %v2331_v14, 0.0  ;;  %v2328_v19 = vadd.f32 %v5144_v2, %v4047_v1 }
 0x23e   :  { %v2621_v3 = vadd.f32 %v2598_v46, %v2597_v11  ;;  %v2371_v21 = vadd.f32 %v2346_v56, %v2345_v48 }
 0x23f   :  { %v2381_v40 = vadd.f32 %v2380_v35, %v2355_v55  ;;  %v2603_v55 = vmax.f32 %v2444_v39, 0.0 }
 0x240   :  { %v2449_v49 = vpop.f32.mrf.mxu2  ;;  %v2372_v15 = vadd.f32 %v2371_v21, %v2347_v29 }
 0x241   :  { %v2478_v44 = vpop.f32.mrf.mxu3  ;;  %v2382_v58 = vadd.f32 %v2381_v40, %v2356_v32  ;;  %v2604_v40 = vmax.f32 %v2473_v10, 0.0  ;;  %v2349_v32 = vmax.f32 %v2299_v37, 0.0 }
 0x242   :  { %v2498_v20 = vpop.f32.mrf.mxu0  ;;  %v2527_v6 = vpop.f32.mrf.mxu1  ;;  %v2373_v46 = vadd.f32 %v2372_v15, %v2348_v42 }
 0x243   :  { %v2499_v22 = vadd.f32 %v2498_v20, %v4337_v57  ;;  %v1600_v7 = vpop.xlane.xlu0 %1599  ;;  %2383 = vadd.xlane.f32.xlu0 %v2382_v58  ;;  %v2528_v17 = vadd.f32 %v2527_v6, %v4337_v57  ;;  %v2450_v58 = vadd.f32 %v2449_v49, %v4404_v52  ;;  %v2479_v20 = vadd.f32 %v2478_v44, %v4404_v52 }
 0x244   :  { %v5188_v5 = vadd.f32 %v1600_v7, %v4985_v36  ;;  %v2628_v30 = vadd.f32 %v2604_v40, %v2603_v55 }
 0x245   :  { %v2599_v13 = vmax.f32 %v2499_v22, 0.0  ;;  %v2600_v34 = vmax.f32 %v2528_v17, 0.0  ;;  %v2635_v22 = vadd.f32 %v2610_v51, %v2609_v60  ;;  %v2615_v48 = vmax.f32 %v2450_v58, 0.0 }
 0x246   :  { %v2616_v56 = vmax.f32 %v2479_v20, 0.0 }
 0x247   :  { %v2622_v24 = vadd.f32 %v2621_v3, %v2599_v13  ;;  %v2374_v3 = vadd.f32 %v2373_v46, %v2349_v32 }
 0x248   :  { %v2556_v25 = vpop.f32.mrf.mxu2  ;;  %v2642_v21 = vadd.f32 %v2616_v56, %v2615_v48 }
 0x249   :  { %v2557_v45 = vadd.f32 %v2556_v25, %v4337_v57  ;;  %v2585_v43 = vpop.f32.mrf.mxu3  ;;  %v2623_v31 = vadd.f32 %v2622_v24, %v2600_v34  ;;  %v2350_v24 = vmax.f32 %v2328_v19, 0.0 }
 0x24a   :  { %v2586_v27 = vadd.f32 %v2585_v43, %v4337_v57  ;;  %v2501_v63 = vpop.f32.mrf.mxu0  ;;  %v2530_v36 = vpop.f32.mrf.mxu1 }
 0x24b   :  { %v2601_v62 = vmax.f32 %v2557_v45, 0.0  ;;  %v2502_v35 = vadd.f32 %v2501_v63, %v4358_v9  ;;  %v2531_v13 = vadd.f32 %v2530_v36, %v4358_v9  ;;  %v2375_v63 = vadd.f32 %v2374_v3, %v2350_v24 }
 0x24c   :  { %v2602_v47 = vmax.f32 %v2586_v27, 0.0 }
 0x24d   :  { %v2624_v38 = vadd.f32 %v2623_v31, %v2601_v62  ;;  %v2605_v6 = vmax.f32 %v2502_v35, 0.0  ;;  %v2606_v34 = vmax.f32 %v2531_v13, 0.0 }
 0x24f   :  { %v2625_v14 = vadd.f32 %v2624_v38, %v2602_v47  ;;  %v2629_v1 = vadd.f32 %v2628_v30, %v2605_v6 }
 0x250   :  { %v2559_v18 = vpop.f32.mrf.mxu2 }
 0x251   :  { %v2588_v23 = vpop.f32.mrf.mxu3  ;;  %2626 = vadd.xlane.f32.xlu2 %v2625_v14  ;;  %v2560_v17 = vadd.f32 %v2559_v18, %v4358_v9  ;;  %v2630_v53 = vadd.f32 %v2629_v1, %v2606_v34 }
 0x252   :  { %v2504_v28 = vpop.f32.mrf.mxu0  ;;  %v2533_v11 = vpop.f32.mrf.mxu1  ;;  %v2589_v59 = vadd.f32 %v2588_v23, %v4358_v9 }
 0x253   :  { %v2505_v12 = vadd.f32 %v2504_v28, %v4381_v33  ;;  %v2534_v16 = vadd.f32 %v2533_v11, %v4381_v33  ;;  %v2607_v29 = vmax.f32 %v2560_v17, 0.0 }
 0x254   :  { %v2608_v35 = vmax.f32 %v2589_v59, 0.0 }
 0x255   :  { %v2611_v7 = vmax.f32 %v2505_v12, 0.0  ;;  %v2612_v49 = vmax.f32 %v2534_v16, 0.0  ;;  %v2631_v10 = vadd.f32 %v2630_v53, %v2607_v29 }
 0x257   :  { %v2636_v4 = vadd.f32 %v2635_v22, %v2611_v7  ;;  %v2632_v28 = vadd.f32 %v2631_v10, %v2608_v35  ;;  %v5221_v22 = vpop.xlane.xlu0 %1856 }
 0x258   :  { %v2562_v2 = vpop.f32.mrf.mxu2 }
 0x259   :  { %v2563_v44 = vadd.f32 %v2562_v2, %v4381_v33  ;;  %v2591_v25 = vpop.f32.mrf.mxu3  ;;  %v2637_v36 = vadd.f32 %v2636_v4, %v2612_v49 }
 0x25a   :  { %v2592_v45 = vadd.f32 %v2591_v25, %v4381_v33  ;;  %v2507_v43 = vpop.f32.mrf.mxu0  ;;  %v2536_v27 = vpop.f32.mrf.mxu1 }
 0x25b   :  { %v2613_v31 = vmax.f32 %v2563_v44, 0.0  ;;  %v2508_v62 = vadd.f32 %v2507_v43, %v4404_v52  ;;  %v2537_v39 = vadd.f32 %v2536_v27, %v4404_v52  ;;  %v5233_v43 = vld [vmem:[%s5342_s1 + $0x60] sm:$0xff] }
 0x25c   :  { %v2614_v38 = vmax.f32 %v2592_v45, 0.0 }
 0x25d   :  { %v2638_v0 = vadd.f32 %v2637_v36, %v2613_v31  ;;  %v2617_v47 = vmax.f32 %v2508_v62, 0.0  ;;  %2376 = vadd.xlane.f32.xlu1 %v2375_v63  ;;  %v2618_v18 = vmax.f32 %v2537_v39, 0.0 }
 0x25f   :  { %v2643_v37 = vadd.f32 %v2642_v21, %v2617_v47  ;;  %v2639_v15 = vadd.f32 %v2638_v0, %v2614_v38 }
 0x260   :  { %v2565_v14 = vpop.f32.mrf.mxu2 }
 0x261   :  { %v2566_v42 = vadd.f32 %v2565_v14, %v4404_v52  ;;  %v2594_v60 = vpop.f32.mrf.mxu3  ;;  %2640 = vadd.xlane.f32.xlu0 %v2639_v15  ;;  %v2644_v40 = vadd.f32 %v2643_v37, %v2618_v18 }
 0x262   :  { %v2595_v51 = vadd.f32 %v2594_v60, %v4404_v52  ;;  %v2700_v55 = vpop.f32.mrf.mxu0  ;;  %v2729_v23 = vpop.f32.mrf.mxu1 }
 0x263   :  { %v2619_v32 = vmax.f32 %v2566_v42, 0.0  ;;  %v2701_v13 = vadd.f32 %v2700_v55, %v4337_v57  ;;  %v2730_v17 = vadd.f32 %v2729_v23, %v4337_v57 }
 0x264   :  { %v2620_v46 = vmax.f32 %v2595_v51, 0.0 }
 0x265   :  { %v2645_v11 = vadd.f32 %v2644_v40, %v2619_v32  ;;  %2633 = vadd.xlane.f32.xlu1 %v2632_v28  ;;  %v2857_v49 = vmax.f32 %v2701_v13, 0.0  ;;  %v2858_v44 = vmax.f32 %v2730_v17, 0.0 }
 0x267   :  { %v2646_v12 = vadd.f32 %v2645_v11, %v2620_v46  ;;  %v2881_v27 = vadd.f32 %v2858_v44, %v2857_v49 }
 0x268   :  { %v2758_v19 = vpop.f32.mrf.mxu2 }
 0x269   :  { %v2787_v58 = vpop.f32.mrf.mxu3  ;;  %2647 = vadd.xlane.f32.xlu2 %v2646_v12  ;;  %v2759_v48 = vadd.f32 %v2758_v19, %v4337_v57 }
 0x26a   :  { %v2703_v20 = vpop.f32.mrf.mxu0  ;;  %v2732_v6 = vpop.f32.mrf.mxu1  ;;  %v2788_v34 = vadd.f32 %v2787_v58, %v4337_v57 }
 0x26b   :  { %v2859_v25 = vmax.f32 %v2759_v48, 0.0  ;;  %v2704_v45 = vadd.f32 %v2703_v20, %v4358_v9  ;;  %v2733_v63 = vadd.f32 %v2732_v6, %v4358_v9 }
 0x26c   :  { %v5225_v4 = vpop.xlane.xlu0 %2109  ;;  %v2860_v59 = vmax.f32 %v2788_v34, 0.0 }
 0x26d   :  { %v2882_v31 = vadd.f32 %v2881_v27, %v2859_v25  ;;  %v2863_v0 = vmax.f32 %v2704_v45, 0.0  ;;  %v2864_v39 = vmax.f32 %v2733_v63, 0.0 }
 0x26f   :  { %v2883_v14 = vadd.f32 %v2882_v31, %v2860_v59  ;;  %v2888_v51 = vadd.f32 %v2864_v39, %v2863_v0 }
 0x270   :  { %v2761_v7 = vpop.f32.mrf.mxu2 }
 0x271   :  { %v2790_v16 = vpop.f32.mrf.mxu3  ;;  %v2762_v62 = vadd.f32 %v2761_v7, %v4358_v9  ;;  %v5251_v13 = vpop.xlane.xlu2 %1842 }
 0x272   :  { %v2706_v30 = vpop.f32.mrf.mxu0  ;;  %v2735_v3 = vpop.f32.mrf.mxu1  ;;  %v2791_v55 = vadd.f32 %v2790_v16, %v4358_v9 }
 0x273   :  { %v2865_v35 = vmax.f32 %v2762_v62, 0.0  ;;  %v2707_v42 = vadd.f32 %v2706_v30, %v4381_v33  ;;  %v2736_v60 = vadd.f32 %v2735_v3, %v4381_v33  ;;  %v5249_v3 = vpop.xlane.xlu1 %1849 }
 0x274   :  { %v2866_v6 = vmax.f32 %v2791_v55, 0.0 }
 0x275   :  { %v2889_v28 = vadd.f32 %v2888_v51, %v2865_v35  ;;  %v2869_v12 = vmax.f32 %v2707_v42, 0.0  ;;  %v2870_v19 = vmax.f32 %v2736_v60, 0.0 }
 0x277   :  { %v2890_v16 = vadd.f32 %v2889_v28, %v2866_v6 }
 0x278   :  { %v2764_v24 = vpop.f32.mrf.mxu2 }
 0x279   :  { %v2793_v56 = vpop.f32.mrf.mxu3 }
 0x27a   :  { %v2709_v1 = vpop.f32.mrf.mxu0  ;;  %v2738_v2 = vpop.f32.mrf.mxu1  ;;  %v2794_v49 = vadd.f32 %v2793_v56, %v4381_v33 }
 0x27b   :  { %v2710_v44 = vadd.f32 %v2709_v1, %v4404_v52  ;;  %v2739_v25 = vadd.f32 %v2738_v2, %v4404_v52  ;;  %v5263_v2 = vpop.xlane.xlu1 %2102 }
 0x280   :  { %v3209_v29 = vpop.permute.xlu0 %3208  ;;  %v2767_v36 = vpop.f32.mrf.mxu2 }
 0x281   :  { %v3230_v21 = vmul.f32 %v3209_v29, %v5233_v43  ;;  %v2796_v53 = vpop.f32.mrf.mxu3  ;;  %v2768_v29 = vadd.f32 %v2767_v36, %v4404_v52 }
 0x282   :  { %v2816_v38 = vpop.f32.mrf.mxu0  ;;  %v2845_v47 = vpop.f32.mrf.mxu1  ;;  %v2797_v35 = vadd.f32 %v2796_v53, %v4404_v52 }
 0x283   :  { %v5239_v10 = vadd.f32 %v5163_v61, %v3230_v21  ;;  %v2817_v37 = vadd.f32 %v2816_v38, %v4337_v57  ;;  %v2846_v15 = vadd.f32 %v2845_v47, %v4337_v57  ;;  %v2765_v61 = vadd.f32 %v2764_v24, %v4381_v33  ;;  %v5272_v6 = vpop.xlane.xlu1 %2123 }
 0x284   :  { %v2895_v24 = vadd.f32 %v2870_v19, %v2869_v12  ;;  %v2872_v21 = vmax.f32 %v2794_v49, 0.0  ;;  %v2875_v38 = vmax.f32 %v2710_v44, 0.0  ;;  %v2876_v47 = vmax.f32 %v2739_v25, 0.0 }
 0x285   :  { %v2861_v18 = vmax.f32 %v2817_v37, 0.0  ;;  %v2862_v40 = vmax.f32 %v2846_v15, 0.0  ;;  %v2871_v17 = vmax.f32 %v2765_v61, 0.0  ;;  %v2877_v37 = vmax.f32 %v2768_v29, 0.0 }
 0x286   :  { %v2902_v36 = vadd.f32 %v2876_v47, %v2875_v38  ;;  %v2878_v12 = vmax.f32 %v2797_v35, 0.0 }
 0x287   :  { %v2884_v23 = vadd.f32 %v2883_v14, %v2861_v18  ;;  %v2896_v63 = vadd.f32 %v2895_v24, %v2871_v17  ;;  %v5265_v14 = vpop.xlane.xlu2 %1863 }
 0x288   :  { %v2960_v32 = vpop.f32.mrf.mxu2  ;;  %v2903_v51 = vadd.f32 %v2902_v36, %v2877_v37 }
 0x289   :  { %v2989_v11 = vpop.f32.mrf.mxu3  ;;  %v2885_v46 = vadd.f32 %v2884_v23, %v2862_v40  ;;  %v2897_v39 = vadd.f32 %v2896_v63, %v2872_v21 }
 0x28a   :  { %v2819_v58 = vpop.f32.mrf.mxu0  ;;  %v2848_v20 = vpop.f32.mrf.mxu1 }
 0x28b   :  { %v2820_v7 = vadd.f32 %v2819_v58, %v4358_v9  ;;  %v2849_v30 = vadd.f32 %v2848_v20, %v4358_v9  ;;  %2886 = vadd.xlane.f32.xlu1 %v2885_v46 }
 0x28d   :  { %v2867_v48 = vmax.f32 %v2820_v7, 0.0  ;;  %v2868_v45 = vmax.f32 %v2849_v30, 0.0  ;;  %v2904_v7 = vadd.f32 %v2903_v51, %v2878_v12  ;;  %v2961_v30 = vadd.f32 %v2960_v32, %v4337_v57  ;;  %v5284_v32 = vld [vmem:[%s5342_s1 + $0x68] sm:$0xff] }
 0x28f   :  { %v2891_v34 = vadd.f32 %v2890_v16, %v2867_v48  ;;  %v2990_v16 = vadd.f32 %v2989_v11, %v4337_v57  ;;  %v5278_v25 = vpop.xlane.xlu2 %2116 }
 0x290   :  { %v5256_v27 = vpop.f32.mrf.mxu2 }
 0x291   :  { %v5259_v31 = vpop.f32.mrf.mxu3  ;;  %v2892_v62 = vadd.f32 %v2891_v34, %v2868_v45  ;;  %v3117_v34 = vmax.f32 %v2961_v30, 0.0  ;;  %v3118_v45 = vmax.f32 %v2990_v16, 0.0 }
 0x292   :  { %v2822_v59 = vpop.f32.mrf.mxu0  ;;  %v2851_v0 = vpop.f32.mrf.mxu1 }
 0x293   :  { %v2823_v56 = vadd.f32 %v2822_v59, %v4381_v33  ;;  %v2852_v1 = vadd.f32 %v2851_v0, %v4381_v33  ;;  %2893 = vadd.xlane.f32.xlu0 %v2892_v62  ;;  %v3141_v11 = vadd.f32 %v3118_v45, %v3117_v34 }
 0x295   :  { %v2873_v15 = vmax.f32 %v2823_v56, 0.0  ;;  %v2874_v42 = vmax.f32 %v2852_v1, 0.0 }
 0x297   :  { %v2898_v18 = vadd.f32 %v2897_v39, %v2873_v15 }
 0x298   :  { %v2966_v60 = vpop.f32.mrf.mxu2 }
 0x299   :  { %v2967_v55 = vadd.f32 %v2966_v60, %v4381_v33  ;;  %v2995_v23 = vpop.f32.mrf.mxu3  ;;  %v2899_v40 = vadd.f32 %v2898_v18, %v2874_v42 }
 0x29a   :  { %v2996_v28 = vadd.f32 %v2995_v23, %v4381_v33  ;;  %v2825_v61 = vpop.f32.mrf.mxu0  ;;  %v2854_v46 = vpop.f32.mrf.mxu1 }
 0x29b   :  { %v3129_v19 = vmax.f32 %v2967_v55, 0.0  ;;  %v2826_v58 = vadd.f32 %v2825_v61, %v4404_v52  ;;  %v2855_v20 = vadd.f32 %v2854_v46, %v4404_v52  ;;  %2900 = vadd.xlane.f32.xlu2 %v2899_v40  ;;  %v2126_v55 = vadd.f32 %v5225_v4, %v5249_v3 }
 0x29c   :  { %v3130_v53 = vmax.f32 %v2996_v28, 0.0 }
 0x29d   :  { %v2879_v17 = vmax.f32 %v2826_v58, 0.0  ;;  %v2880_v49 = vmax.f32 %v2855_v20, 0.0 }
 0x29e   :  { %v5276_v48 = vadd.f32 %v3130_v53, %v3129_v19 }
 0x29f   :  { %v2905_v24 = vadd.f32 %v2904_v7, %v2879_v17 }
 0x2a0   :  { %v2969_v44 = vpop.f32.mrf.mxu2 }
 0x2a1   :  { %v2998_v63 = vpop.f32.mrf.mxu3  ;;  %v2906_v29 = vadd.f32 %v2905_v24, %v2880_v49  ;;  %v2970_v30 = vadd.f32 %v2969_v44, %v4404_v52 }
 0x2a2   :  { %v3018_v62 = vpop.f32.mrf.mxu0  ;;  %v3047_v21 = vpop.f32.mrf.mxu1  ;;  %v2999_v4 = vadd.f32 %v2998_v63, %v4404_v52 }
 0x2a3   :  { %v3019_v59 = vadd.f32 %v3018_v62, %v4337_v57  ;;  %2907 = vadd.xlane.f32.xlu1 %v2906_v29  ;;  %v3048_v38 = vadd.f32 %v3047_v21, %v4337_v57  ;;  %v3135_v17 = vmax.f32 %v2970_v30, 0.0 }
 0x2a4   :  { %v3136_v24 = vmax.f32 %v2999_v4, 0.0 }
 0x2a5   :  { %v3119_v0 = vmax.f32 %v3019_v59, 0.0  ;;  %v3214_v47 = vpop.permute.xlu1 %3213  ;;  %v3120_v15 = vmax.f32 %v3048_v38, 0.0  ;;  %v2370_v36 = vpop.xlane.xlu2 %2369 }
 0x2a6   :  { %v3231_v56 = vmul.f32 %v3214_v47, %v5284_v32  ;;  %v2386_v28 = vadd.f32 %v2370_v36, %v2126_v55  ;;  %v3162_v21 = vadd.f32 %v3136_v24, %v3135_v17  ;;  %v2993_v36 = vadd.f32 %v5259_v31, %v4358_v9 }
 0x2a7   :  { %v3142_v1 = vadd.f32 %v3141_v11, %v3119_v0 }
 0x2a8   :  { %v5289_v39 = vadd.f32 %v5239_v10, %v3231_v56  ;;  %v3076_v37 = vpop.f32.mrf.mxu2  ;;  %v2390_v19 = vmul.f32 0.00043402778, %v2386_v28  ;;  %v3124_v55 = vmax.f32 %v2993_v36, 0.0 }
 0x2a9   :  { %v3077_v35 = vadd.f32 %v3076_v37, %v4337_v57  ;;  %v3105_v18 = vpop.f32.mrf.mxu3  ;;  %v3143_v23 = vadd.f32 %v3142_v1, %v3120_v15  ;;  %v2964_v15 = vadd.f32 %v5256_v27, %v4358_v9 }
 0x2aa   :  { %v3106_v42 = vadd.f32 %v3105_v18, %v4337_v57  ;;  %v3021_v60 = vpop.f32.mrf.mxu0  ;;  %v3050_v51 = vpop.f32.mrf.mxu1  ;;  %v2125_v57 = vadd.f32 %v5263_v2, %v5251_v13 }
 0x2ab   :  { %v3121_v40 = vmax.f32 %v3077_v35, 0.0  ;;  %v2363_v7 = vpop.xlane.xlu0 %2362  ;;  %v3022_v18 = vadd.f32 %v3021_v60, %v4358_v9 }
 0x2ac   :  { %v3122_v46 = vmax.f32 %v3106_v42, 0.0  ;;  %v2385_v3 = vadd.f32 %v2363_v7, %v2125_v57  ;;  %v3123_v42 = vmax.f32 %v2964_v15, 0.0 }
 0x2ad   :  { %v3144_v61 = vadd.f32 %v3143_v23, %v3121_v40  ;;  %v3125_v23 = vmax.f32 %v3022_v18, 0.0 }
 0x2ae   :  { %v2389_v34 = vmul.f32 0.00043402778, %v2385_v3  ;;  %v3148_v40 = vadd.f32 %v3124_v55, %v3123_v42 }
 0x2af   :  { %v3145_v10 = vadd.f32 %v3144_v61, %v3122_v46  ;;  %v2127_v61 = vadd.f32 %v5278_v25, %v5221_v22  ;;  %v2128_v22 = vadd.f32 %v5272_v6, %v5265_v14 }
 0x2b0   :  { %v3079_v12 = vpop.f32.mrf.mxu2  ;;  %v3149_v46 = vadd.f32 %v3148_v40, %v3125_v23 }
 0x2b1   :  { %v3108_v58 = vpop.f32.mrf.mxu3  ;;  %3146 = vadd.xlane.f32.xlu0 %v3145_v10  ;;  %v3080_v28 = vadd.f32 %v3079_v12, %v4358_v9 }
 0x2b2   :  { %v3024_v20 = vpop.f32.mrf.mxu0  ;;  %v3053_v53 = vpop.f32.mrf.mxu1  ;;  %v3109_v60 = vadd.f32 %v3108_v58, %v4358_v9 }
 0x2b3   :  { %3255 = vperm.xlu2 %3685, %v2390_v19   ;;  %v3127_v31 = vmax.f32 %v3080_v28, 0.0  ;;  %v3054_v24 = vadd.f32 %v3053_v53, %v4381_v33 }
 0x2b4   :  { %v3128_v4 = vmax.f32 %v3109_v60, 0.0 }
 0x2b5   :  { %v3132_v58 = vmax.f32 %v3054_v24, 0.0 }
 0x2b6   :  { %v2384_v12 = vpop.xlane.xlu0 %2383 }
 0x2b7   :  { %v2388_v25 = vadd.f32 %v2384_v12, %v2128_v22 }
 0x2b8   :  { %v3082_v16 = vpop.f32.mrf.mxu2 }
 0x2b9   :  { %v3111_v49 = vpop.f32.mrf.mxu3 }
 0x2ba   :  { %v3027_v45 = vpop.f32.mrf.mxu0  ;;  %v3056_v29 = vpop.f32.mrf.mxu1 }
 0x2bb   :  { %v3028_v62 = vadd.f32 %v3027_v45, %v4404_v52  ;;  %v3057_v11 = vadd.f32 %v3056_v29, %v4404_v52  ;;  %v2392_v45 = vmul.f32 0.00043402778, %v2388_v25 }
 0x2bc   :  { %3250 = vperm.xlu1 %3686, %v2389_v34   ;;  %v3083_v34 = vadd.f32 %v3082_v16, %v4381_v33 }
 0x2bd   :  { %v3137_v59 = vmax.f32 %v3028_v62, 0.0  ;;  %v3138_v44 = vmax.f32 %v3057_v11, 0.0 }
 0x2be   :  { %v3133_v29 = vmax.f32 %v3083_v34, 0.0 }
 0x2bf   :  { %v3163_v13 = vadd.f32 %v3162_v21, %v3137_v59  ;;  %v3112_v21 = vadd.f32 %v3111_v49, %v4381_v33 }
 0x2c0   :  { %v3085_v2 = vpop.f32.mrf.mxu2 }
 0x2c1   :  { %v3086_v63 = vadd.f32 %v3085_v2, %v4404_v52  ;;  %v3114_v0 = vpop.f32.mrf.mxu3  ;;  %v3164_v47 = vadd.f32 %v3163_v13, %v3138_v44  ;;  %v3134_v59 = vmax.f32 %v3112_v21, 0.0 }
 0x2c2   :  { %v3115_v38 = vadd.f32 %v3114_v0, %v4404_v52  ;;  %v3051_v52 = vadd.f32 %v3050_v51, %v4358_v9  ;;  %v3025_v51 = vadd.f32 %v3024_v20, %v4381_v33 }
 0x2c3   :  { %v3139_v56 = vmax.f32 %v3086_v63, 0.0 }
 0x2c4   :  { %v3140_v37 = vmax.f32 %v3115_v38, 0.0  ;;  %v3126_v19 = vmax.f32 %v3051_v52, 0.0  ;;  %v3131_v17 = vmax.f32 %v3025_v51, 0.0  ;;  %v2627_v14 = vpop.xlane.xlu2 %2626 }
 0x2c5   :  { %v3165_v1 = vadd.f32 %v3164_v47, %v3139_v56 }
 0x2c6   :  { %v3150_v57 = vadd.f32 %v3149_v46, %v3126_v19  ;;  %v3156_v9 = vadd.f32 %v5276_v48, %v3131_v17  ;;  %v1607_v46 = vmul.f32 0.00043402778, %v5166_v50  ;;  %v1608_v19 = vmul.f32 0.00043402778, %v5188_v5  ;;  %v3183_v5 = vld [vmem:[%s5342_s1 + $0x70] sm:$0xff] }
 0x2c7   :  { %v3166_v35 = vadd.f32 %v3165_v1, %v3140_v37 }
 0x2c8   :  { %v3151_v30 = vadd.f32 %v3150_v57, %v3127_v31  ;;  %v3157_v62 = vadd.f32 %v3156_v9, %v3132_v58 }
 0x2c9   :  { %3167 = vadd.xlane.f32.xlu0 %v3166_v35 }
 0x2ca   :  { %v3152_v3 = vadd.f32 %v3151_v30, %v3128_v4  ;;  %v3158_v20 = vadd.f32 %v3157_v62, %v3133_v29 }
 0x2cc   :  { %v3159_v11 = vadd.f32 %v3158_v20, %v3134_v59 }
 0x2d0   :  { %v2377_v27 = vpop.xlane.xlu1 %2376 }
 0x2d1   :  { %v2387_v10 = vadd.f32 %v2377_v27, %v2127_v61 }
 0x2d3   :  { %v2391_v7 = vmul.f32 0.00043402778, %v2387_v10 }
 0x2d4   :  { %v2641_v6 = vpop.xlane.xlu0 %2640 }
 0x2d5   :  { %3260 = vperm.xlu1 %3686, %v2391_v7  }
 0x2d8   :  { %v2634_v13 = vpop.xlane.xlu1 %2633 }
 0x2dc   :  { %3153 = vadd.xlane.f32.xlu2 %v3152_v3  ;;  %v2648_v2 = vpop.xlane.xlu2 %2647  ;;  %v3184_v3 = vld [vmem:[%s5342_s1 + $0x78] sm:$0xff] }
 0x2f4   :  { %3265 = vperm.xlu2 %3685, %v2392_v45  }
 0x2fe   :  { %v2887_v44 = vpop.xlane.xlu1 %2886 }
 0x2ff   :  { %3160 = vadd.xlane.f32.xlu1 %v3159_v11  ;;  %v2909_v63 = vadd.f32 %v2887_v44, %v2627_v14 }
 0x306   :  { %v2894_v53 = vpop.xlane.xlu0 %2893 }
 0x307   :  { %v2910_v40 = vadd.f32 %v2894_v53, %v2634_v13 }
 0x30e   :  { %v2901_v16 = vpop.xlane.xlu2 %2900 }
 0x316   :  { %v2908_v38 = vpop.xlane.xlu1 %2907  ;;  %v3256_v56 = vpop.permute.xlu2 %3255 }
 0x317   :  { %v3289_v33 = vmul.f32 %v3256_v56, %v5052_v54  ;;  %v2912_v15 = vadd.f32 %v2908_v38, %v2648_v2  ;;  %v2911_v54 = vadd.f32 %v2901_v16, %v2641_v6  ;;  %v3185_v2 = vld [vmem:[%s5342_s1 + $0x80] sm:$0x1] }
 0x324   :  { %v3147_v0 = vpop.xlane.xlu0 %3146 }
 0x325   :  { %v3169_v48 = vadd.f32 %v3147_v0, %v2909_v63 }
 0x327   :  { %v3173_v47 = vmul.f32 0.00043402778, %v3169_v48 }
 0x329   :  { %3270 = vperm.xlu1 %3686, %v3173_v47  }
 0x32e   :  { %v3251_v1 = vpop.permute.xlu1 %3250 }
 0x32f   :  { %v3288_v49 = vmul.f32 %v3251_v1, %v5047_v8 }
 0x331   :  { %v3296_v37 = vadd.f32 %v3289_v33, %v3288_v49 }
 0x33c   :  { %v3168_v36 = vpop.xlane.xlu0 %3167 }
 0x33d   :  { %v3172_v35 = vadd.f32 %v3168_v36, %v2912_v15 }
 0x33f   :  { %v3176_v18 = vmul.f32 0.00043402778, %v3172_v35 }
 0x341   :  { %3285 = vperm.xlu1 %3686, %v3176_v18  }
 0x347   :  { %v3261_v42 = vpop.permute.xlu1 %3260 }
 0x348   :  { %v3290_v55 = vmul.f32 %v3261_v42, %v5079_v26 }
 0x34a   :  { %v3297_v23 = vadd.f32 %v3296_v37, %v3290_v55 }
 0x34f   :  { %v3154_v52 = vpop.xlane.xlu2 %3153 }
 0x350   :  { %v3170_v28 = vadd.f32 %v3154_v52, %v2910_v40 }
 0x352   :  { %v3174_v61 = vmul.f32 0.00043402778, %v3170_v28 }
 0x354   :  { %3275 = vperm.xlu2 %3685, %v3174_v61  }
 0x357   :  { %v3266_v31 = vpop.permute.xlu2 %3265 }
 0x358   :  { %v3291_v57 = vmul.f32 %v3266_v31, %v5153_v41 }
 0x35a   :  { %v3298_v30 = vadd.f32 %v3297_v23, %v3291_v57 }
 0x35c   :  { %3218 = vperm.xlu2 %3685, %v1607_v46  }
 0x372   :  { %v3161_v8 = vpop.xlane.xlu1 %3160 }
 0x373   :  { %v3171_v27 = vadd.f32 %v3161_v8, %v2911_v54 }
 0x375   :  { %v3175_v10 = vmul.f32 0.00043402778, %v3171_v27 }
 0x377   :  { %3280 = vperm.xlu0 %3687, %v3175_v10  }
 0x37f   :  { %3223 = vperm.xlu0 %3687, %v1608_v19  }
 0x39b   :  { %v3271_v7 = vpop.permute.xlu1 %3270 }
 0x39c   :  { %v3292_v60 = vmul.f32 %v3271_v7, %v5233_v43 }
 0x39e   :  { %v3299_v50 = vadd.f32 %v3298_v30, %v3292_v60 }
 0x3ae   :  { %v3276_v26 = vpop.permute.xlu2 %3275 }
 0x3af   :  { %v3293_v4 = vmul.f32 %v3276_v26, %v5284_v32 }
 0x3b1   :  { %v3300_v22 = vadd.f32 %v3299_v50, %v3293_v4 }
 0x3b3   :  { %v3286_v51 = vpop.permute.xlu1 %3285 }
 0x3b4   :  { %v3295_v41 = vmul.f32 %v3286_v51, %v3184_v3 }
 0x3b6   :  { %v3219_v17 = vpop.permute.xlu2 %3218 }
 0x3b7   :  { %v3232_v43 = vmul.f32 %v3219_v17, %v3183_v5 }
 0x3b9   :  { %v3239_v9 = vadd.f32 %v5289_v39, %v3232_v43 }
 0x3e9   :  { %v3281_v12 = vpop.permute.xlu0 %3280 }
 0x3ea   :  { %v3294_v25 = vmul.f32 %v3281_v12, %v3183_v5 }
 0x3ec   :  { %v3301_v24 = vadd.f32 %v3300_v22, %v3294_v25 }
 0x3ee   :  { %v3302_v34 = vadd.f32 %v3301_v24, %v3295_v41 }
 0x3f0   :  { %v3303_v45 = vrot.slane %v3302_v34, 4 }
 0x3f1   :  { %v3224_v32 = vpop.permute.xlu0 %3223 }
 0x3f2   :  { %v3304_v58 = vadd.f32 %v3303_v45, %v3302_v34  ;;  %v3233_v29 = vmul.f32 %v3224_v32, %v3184_v3 }
 0x3f4   :  { %v3305_v62 = vrot.slane %v3304_v58, 2  ;;  %v3240_v21 = vadd.f32 %v3239_v9, %v3233_v29 }
 0x3f6   :  { %v3306_v20 = vadd.f32 %v3305_v62, %v3304_v58  ;;  %v3241_v59 = vrot.slane %v3240_v21, 4 }
 0x3f8   :  { %v3307_v11 = vrot.slane %v3306_v20, 1  ;;  %v3242_v14 = vadd.f32 %v3241_v59, %v3240_v21 }
 0x3fa   :  { %v3308_v6 = vadd.f32 %v3307_v11, %v3306_v20  ;;  %v3243_v13 = vrot.slane %v3242_v14, 2 }
 0x3fc   :  { %v3244_v53 = vadd.f32 %v3243_v13, %v3242_v14  ;;  %v3309_v16 = vadd.f32 %v3308_v6, %v3185_v2 }
 0x3fe   :  { %v3245_v44 = vrot.slane %v3244_v53, 1  ;;  %v3311_v0 = vrot.slane %v3309_v16, 7 }
 0x400   :  { %v3246_v63 = vadd.f32 %v3245_v44, %v3244_v53 }
 0x402   :  { %v3247_v39 = vadd.f32 %v3246_v63, %v3185_v2 }
 0x404   :  { %v3314_v48 = vsel %vm3313_vm2, %v3247_v39, %v3311_v0 }
 0x405   :  { %3315 = vst [vmem:[%s5343_s2] sm:$0x3] %v3314_v48 }

</bundles_post_ra>
